<compile_context>
chip_gen: v7x
topology: tpu7x:2x2x1
jax: 0.10.0
libtpu: 0.0.40
codegen_flags: <defaults>
</compile_context>

<pallas_src>
import numpy as np

import jax
import jax.numpy as jnp
from jax.experimental import pallas as pl
from jax.experimental.pallas import tpu as pltpu


LANE = 128  # TPU lane width; W(16) * C(8) = 128 makes the slabs lane-dense.


# ----------------------------------------------------------------------------
# Fused whole-network kernel (one grid step == one sample).
# ----------------------------------------------------------------------------
def _fused_net_kernel(x_ref, w1_ref, b1_ref, w2_ref, b2_ref, w3_ref, b3_ref,
                      w4_ref, b4_ref, wl1_ref, bl1_ref, wl2_ref, bl2_ref,
                      o_ref):
    bf16 = jnp.bfloat16
    f32 = jnp.float32

    def shift_rows(x, d):
        """y[r, :] = x[r + d, :]; rows shifted in from outside are zero
        (this is exactly the conv zero padding in the H direction)."""
        if d == 0:
            return x
        r, c = x.shape
        z = jnp.zeros((abs(d), c), x.dtype)
        if d > 0:
            return jnp.concatenate([x[d:, :], z], axis=0)
        return jnp.concatenate([z, x[:r + d, :]], axis=0)

    # conv1 (4x4, s2, p1, 3->8): row-lowered matmul.  One patch row holds the
    # 4 padded input rows needed for one output row; the W-direction window
    # (and stride 2) is folded into w1's banded columns.
    a = jnp.dot(x_ref[...], w1_ref[...], preferred_element_type=f32)
    a = jnp.maximum(a + b1_ref[...], 0.0)                     # (16,128) f32 slab

    # conv2 / conv3 (3x3, s1, p1, 8->8): 3 row-shifted matmuls against banded
    # (in-W) block weights; H padding comes from the zero-filled row shift.
    for w_ref, b_ref in ((w2_ref, b2_ref), (w3_ref, b3_ref)):
        acc = jnp.zeros((16, LANE), f32)
        for ki in range(3):
            xs = shift_rows(a, ki - 1).astype(bf16)
            acc = acc + jnp.dot(xs, w_ref[ki], preferred_element_type=f32)
        a = jnp.maximum(acc + b_ref[...], 0.0)                # (16,128) f32

    # conv4 (4x4, s2, p1, 8->8): stride-2-in-W folded into banded weights;
    # evaluated at every h row (the even rows are the real stride-2 outputs,
    # the odd rows are harmless extra work and are ignored by the head).
    acc4 = jnp.zeros((16, 64), f32)
    for ki in range(4):
        xs = shift_rows(a, ki - 1).astype(bf16)
        acc4 = acc4 + jnp.dot(xs, w4_ref[ki], preferred_element_type=f32)
    a4 = jnp.maximum(acc4 + b4_ref[...], 0.0)                 # (16,64) f32

    # Head: linear1 (+ReLU) + linear2.  The NCHW flatten is folded into wl1's
    # per-output-row weight blocks, so no in-kernel reshape is needed.
    hid = jnp.zeros((1, LANE), f32)
    for hp in range(8):
        row = a4[2 * hp:2 * hp + 1, :].astype(bf16)           # (1,64) even row
        hid = hid + jnp.dot(row, wl1_ref[hp], preferred_element_type=f32)
    hid = jnp.maximum(hid + bl1_ref[...], 0.0).astype(bf16)
    logits = jnp.dot(hid, wl2_ref[...], preferred_element_type=f32) + bl2_ref[...]
    o_ref[0] = logits                                         # (1,128) f32


# ----------------------------------------------------------------------------
# Thin JAX glue: conv1 row-lowered patches (only per-call data preparation).
# ----------------------------------------------------------------------------
def _conv1_row_patches(x_nchw, dtype=jnp.bfloat16):
    """(B,3,32,32) -> (B*16, 512): for each conv1 output row, the 4 padded
    input rows (each 34*3=102 values zero-padded to 128 lanes) it reads."""
    B = x_nchw.shape[0]
    x = jnp.transpose(x_nchw, (0, 2, 3, 1))                   # NHWC (B,32,32,3)
    x = jnp.pad(x, ((0, 0), (1, 1), (1, 1), (0, 0)))          # (B,34,34,3)
    x = x.reshape(B, 34, 34 * 3)
    x = jnp.pad(x, ((0, 0), (0, 0), (0, LANE - 34 * 3)))      # (B,34,128)
    rows = [x[:, ki:ki + 31:2, :] for ki in range(4)]         # 4 x (B,16,128)
    p = jnp.concatenate(rows, axis=-1)                        # (B,16,512)
    return p.reshape(B * 16, 4 * LANE).astype(dtype)


# ----------------------------------------------------------------------------
# Forward pass: one pallas_call for the whole network.
# ----------------------------------------------------------------------------
def forward(prep, x_nchw):
    B = x_nchw.shape[0]
    patches = _conv1_row_patches(x_nchw)                      # (B*16, 512) bf16

    def full(shape):
        return pl.BlockSpec(shape, lambda b, _s=shape: (0,) * len(_s))

    out = pl.pallas_call(
        _fused_net_kernel,
        out_shape=jax.ShapeDtypeStruct((B, 1, LANE), jnp.float32),
        grid=(B,),
        in_specs=[
            pl.BlockSpec((16, 4 * LANE), lambda b: (b, 0)),   # conv1 patches
            full((4 * LANE, LANE)), full((1, LANE)),          # w1, b1
            full((3, LANE, LANE)), full((1, LANE)),           # w2, b2
            full((3, LANE, LANE)), full((1, LANE)),           # w3, b3
            full((4, LANE, 64)), full((1, 64)),               # w4, b4
            full((8, 64, LANE)), full((1, LANE)),             # wl1, bl1
            full((LANE, LANE)), full((1, LANE)),              # wl2, bl2
        ],
        out_specs=pl.BlockSpec((1, 1, LANE), lambda b: (b, 0, 0)),
        compiler_params=pltpu.CompilerParams(
            dimension_semantics=("parallel",)),
    )(patches, prep["w1"], prep["b1"], prep["w2"], prep["b2"],
      prep["w3"], prep["b3"], prep["w4"], prep["b4"],
      prep["wl1"], prep["bl1"], prep["wl2"], prep["bl2"])
    return out.reshape(B, LANE)[:, :10]                       # drop lane padding


# ----------------------------------------------------------------------------
# Parameters: PyTorch-style init + one-time layout preparation (host side).
# ----------------------------------------------------------------------------
def init_params(key):
    def uniform(key, shape, fan_in):
        bound = 1.0 / jnp.sqrt(jnp.float32(fan_in))
        return jax.random.uniform(key, shape, jnp.float32, -bound, bound)

    ks = jax.random.split(key, 12)
    return {
        "conv1_w": uniform(ks[0], (8, 3, 4, 4), 3 * 4 * 4),
        "conv1_b": uniform(ks[1], (8,), 3 * 4 * 4),
        "conv2_w": uniform(ks[2], (8, 8, 3, 3), 8 * 3 * 3),
        "conv2_b": uniform(ks[3], (8,), 8 * 3 * 3),
        "conv3_w": uniform(ks[4], (8, 8, 3, 3), 8 * 3 * 3),
        "conv3_b": uniform(ks[5], (8,), 8 * 3 * 3),
        "conv4_w": uniform(ks[6], (8, 8, 4, 4), 8 * 4 * 4),
        "conv4_b": uniform(ks[7], (8,), 8 * 4 * 4),
        "lin1_w": uniform(ks[8], (100, 8 * 8 * 8), 8 * 8 * 8),
        "lin1_b": uniform(ks[9], (100,), 8 * 8 * 8),
        "lin2_w": uniform(ks[10], (10, 100), 100),
        "lin2_b": uniform(ks[11], (10,), 100),
    }


def prepare_params(params, compute_dtype=jnp.bfloat16):
    """One-time prep of banded / block weight matrices and tiled bias rows."""
    c1 = np.asarray(params["conv1_w"], np.float32)   # (8,3,4,4)  OIHW
    c2 = np.asarray(params["conv2_w"], np.float32)   # (8,8,3,3)
    c3 = np.asarray(params["conv3_w"], np.float32)
    c4 = np.asarray(params["conv4_w"], np.float32)   # (8,8,4,4)
    l1 = np.asarray(params["lin1_w"], np.float32)    # (100, 512), torch (C,H,W) cols
    l2 = np.asarray(params["lin2_w"], np.float32)    # (10, 100)

    # conv1 row-lowered weight: rows = (ki, padded col wj, c_in), cols = (w, c_out).
    w1 = np.zeros((4 * LANE, LANE), np.float32)
    for ki in range(4):
        for kj in range(4):
            blk = c1[:, :, ki, kj].T                          # (c_in=3, c_out=8)
            for wo in range(16):
                wj = 2 * wo + kj                              # padded input col
                r0 = ki * LANE + wj * 3
                w1[r0:r0 + 3, wo * 8:(wo + 1) * 8] = blk

    def banded_3x3(cw):
        w = np.zeros((3, LANE, LANE), np.float32)
        for ki in range(3):
            for kj in range(3):
                blk = cw[:, :, ki, kj].T                      # (c_in, c_out)
                for wo in range(16):
                    wi = wo + kj - 1
                    if 0 <= wi < 16:
                        w[ki, wi * 8:(wi + 1) * 8, wo * 8:(wo + 1) * 8] = blk
        return w

    w4 = np.zeros((4, LANE, 64), np.float32)
    for ki in range(4):
        for kj in range(4):
            blk = c4[:, :, ki, kj].T
            for wo in range(8):
                wi = 2 * wo + kj - 1
                if 0 <= wi < 16:
                    w4[ki, wi * 8:(wi + 1) * 8, wo * 8:(wo + 1) * 8] = blk

    # linear1: fold PyTorch's (C,H,W) flatten into per-output-row weight blocks.
    wl1 = np.zeros((8, 64, LANE), np.float32)
    wl1[:, :, :100] = np.transpose(
        l1.reshape(100, 8, 8, 8), (2, 3, 1, 0)).reshape(8, 64, 100)
    wl2 = np.zeros((LANE, LANE), np.float32)
    wl2[:100, :10] = l2.T

    def frow(v):
        return jnp.asarray(np.asarray(v, np.float32).reshape(1, -1), jnp.float32)

    return {
        "w1": jnp.asarray(w1, compute_dtype),
        "b1": frow(np.tile(np.asarray(params["conv1_b"], np.float32), 16)),
        "w2": jnp.asarray(banded_3x3(c2), compute_dtype),
        "b2": frow(np.tile(np.asarray(params["conv2_b"], np.float32), 16)),
        "w3": jnp.asarray(banded_3x3(c3), compute_dtype),
        "b3": frow(np.tile(np.asarray(params["conv3_b"], np.float32), 16)),
        "w4": jnp.asarray(w4, compute_dtype),
        "b4": frow(np.tile(np.asarray(params["conv4_b"], np.float32), 8)),
        "wl1": jnp.asarray(wl1, compute_dtype),
        "bl1": frow(np.pad(np.asarray(params["lin1_b"], np.float32),
                           (0, LANE - 100))),
        "wl2": jnp.asarray(wl2, compute_dtype),
        "bl2": frow(np.pad(np.asarray(params["lin2_b"], np.float32),
                           (0, LANE - 10))),
    }


# ----------------------------------------------------------------------------
# Pure-f32 JAX reference (PyTorch semantics) for the correctness check.
# ----------------------------------------------------------------------------
def forward_ref(params, x):
    def conv(x, w, b, stride, pad):
        y = jax.lax.conv_general_dilated(
            x, w, window_strides=(stride, stride),
            padding=((pad, pad), (pad, pad)),
            dimension_numbers=("NCHW", "OIHW", "NCHW"))
        return jnp.maximum(y + b[None, :, None, None], 0.0)

    out = conv(x, params["conv1_w"], params["conv1_b"], 2, 1)
    out = conv(out, params["conv2_w"], params["conv2_b"], 1, 1)
    out = conv(out, params["conv3_w"], params["conv3_b"], 1, 1)
    out = conv(out, params["conv4_w"], params["conv4_b"], 2, 1)
    out = out.reshape(out.shape[0], -1)
    out = jnp.maximum(out @ params["lin1_w"].T + params["lin1_b"], 0.0)
    return out @ params["lin2_w"].T + params["lin2_b"]


if __name__ == "__main__":
    key = jax.random.PRNGKey(0)
    pkey, xkey = jax.random.split(key)
    params = init_params(pkey)
    prep = prepare_params(params)   # one-time banded/padded bf16 weights

    # linear1 expects 8*8*8 features -> the module implies 32x32 RGB input.
    x = jax.random.normal(xkey, (2, 3, 32, 32), jnp.float32)

    fwd = jax.jit(forward)
    out = jax.block_until_ready(fwd(prep, x))

    ref = jax.block_until_ready(jax.jit(forward_ref)(params, x))

    assert out.shape == (2, 10), out.shape
    err = float(jnp.max(jnp.abs(out.astype(jnp.float32) - ref)))
    assert err < 5e-2, ("mismatch vs f32 reference", err)
    print("KERNEL_OK")
</pallas_src>

<mosaic_0001>
module attributes {stable_mosaic.version = 11 : i64} {
  func.func @_fused_net_kernel(%arg0: i32, %arg1: memref<16x512xbf16, #tpu.memory_space<vmem>>, %arg2: memref<512x128xbf16, #tpu.memory_space<vmem>>, %arg3: memref<1x128xf32, #tpu.memory_space<vmem>>, %arg4: memref<3x128x128xbf16, #tpu.memory_space<vmem>>, %arg5: memref<1x128xf32, #tpu.memory_space<vmem>>, %arg6: memref<3x128x128xbf16, #tpu.memory_space<vmem>>, %arg7: memref<1x128xf32, #tpu.memory_space<vmem>>, %arg8: memref<4x128x64xbf16, #tpu.memory_space<vmem>>, %arg9: memref<1x64xf32, #tpu.memory_space<vmem>>, %arg10: memref<8x64x128xbf16, #tpu.memory_space<vmem>>, %arg11: memref<1x128xf32, #tpu.memory_space<vmem>>, %arg12: memref<128x128xbf16, #tpu.memory_space<vmem>>, %arg13: memref<1x128xf32, #tpu.memory_space<vmem>>, %arg14: memref<1x1x128xf32, #tpu.memory_space<vmem>>) attributes {dimension_semantics = [#tpu.dimension_semantics<parallel>], iteration_bounds = array<i64: 2>, scalar_prefetch = 0 : i64, scratch_operands = 0 : i64, tpu.core_type = #tpu.core_type<tc>, window_params = [{transform_indices = @transform_0, window_bounds = array<i64: 16, 512>}, {pipeline_mode = #tpu.pipeline_mode<synchronous>, transform_indices = @transform_1, window_bounds = array<i64: 512, 128>}, {pipeline_mode = #tpu.pipeline_mode<synchronous>, transform_indices = @transform_2, window_bounds = array<i64: 1, 128>}, {pipeline_mode = #tpu.pipeline_mode<synchronous>, transform_indices = @transform_3, window_bounds = array<i64: 3, 128, 128>}, {pipeline_mode = #tpu.pipeline_mode<synchronous>, transform_indices = @transform_4, window_bounds = array<i64: 1, 128>}, {pipeline_mode = #tpu.pipeline_mode<synchronous>, transform_indices = @transform_5, window_bounds = array<i64: 3, 128, 128>}, {pipeline_mode = #tpu.pipeline_mode<synchronous>, transform_indices = @transform_6, window_bounds = array<i64: 1, 128>}, {pipeline_mode = #tpu.pipeline_mode<synchronous>, transform_indices = @transform_7, window_bounds = array<i64: 4, 128, 64>}, {pipeline_mode = #tpu.pipeline_mode<synchronous>, transform_indices = @transform_8, window_bounds = array<i64: 1, 64>}, {pipeline_mode = #tpu.pipeline_mode<synchronous>, transform_indices = @transform_9, window_bounds = array<i64: 8, 64, 128>}, {pipeline_mode = #tpu.pipeline_mode<synchronous>, transform_indices = @transform_10, window_bounds = array<i64: 1, 128>}, {pipeline_mode = #tpu.pipeline_mode<synchronous>, transform_indices = @transform_11, window_bounds = array<i64: 128, 128>}, {pipeline_mode = #tpu.pipeline_mode<synchronous>, transform_indices = @transform_12, window_bounds = array<i64: 1, 128>}, {transform_indices = @transform_13, window_bounds = array<i64: 1, 1, 128>}]} {
    %c0 = arith.constant 0 : index
    %c0_0 = arith.constant 0 : index
    %0 = vector.load %arg1[%c0, %c0_0] : memref<16x512xbf16, #tpu.memory_space<vmem>>, vector<16x512xbf16>
    %c0_1 = arith.constant 0 : index
    %c0_2 = arith.constant 0 : index
    %1 = vector.load %arg2[%c0_1, %c0_2] : memref<512x128xbf16, #tpu.memory_space<vmem>>, vector<512x128xbf16>
    %cst = arith.constant dense<0.000000e+00> : vector<16x128xf32>
    %2 = tpu.matmul %0, %1, %cst {dimension_numbers = #tpu.dot_dimension_numbers<[1], [0], [0], [1], [0, 0, 1, 1], [], []>} : vector<16x512xbf16>, vector<512x128xbf16>, vector<16x128xf32> -> vector<16x128xf32>
    %c0_3 = arith.constant 0 : index
    %c0_4 = arith.constant 0 : index
    %3 = vector.load %arg3[%c0_3, %c0_4] : memref<1x128xf32, #tpu.memory_space<vmem>>, vector<1x128xf32>
    %4 = vector.broadcast %3 : vector<1x128xf32> to vector<16x128xf32>
    %5 = arith.addf %2, %4 : vector<16x128xf32>
    %cst_5 = arith.constant 0.000000e+00 : f32
    %6 = vector.broadcast %cst_5 : f32 to vector<16x128xf32>
    %7 = arith.maximumf %5, %6 : vector<16x128xf32>
    %cst_6 = arith.constant 0.000000e+00 : f32
    %8 = vector.broadcast %cst_6 : f32 to vector<16x128xf32>
    %cst_7 = arith.constant 0.000000e+00 : f32
    %9 = vector.broadcast %cst_7 : f32 to vector<1x128xf32>
    %10 = vector.extract_strided_slice %7 {offsets = [0, 0], sizes = [15, 128], strides = [1, 1]} : vector<16x128xf32> to vector<15x128xf32>
    %11 = tpu.concatenate %9, %10 in 0 : vector<1x128xf32>, vector<15x128xf32> -> vector<16x128xf32>
    %12 = arith.truncf %11 : vector<16x128xf32> to vector<16x128xbf16>
    %c0_8 = arith.constant 0 : index
    %c0_9 = arith.constant 0 : index
    %c0_10 = arith.constant 0 : index
    %13 = vector.load %arg4[%c0_8, %c0_9, %c0_10] : memref<3x128x128xbf16, #tpu.memory_space<vmem>>, vector<1x128x128xbf16>
    %14 = vector.shape_cast %13 : vector<1x128x128xbf16> to vector<128x128xbf16>
    %cst_11 = arith.constant dense<0.000000e+00> : vector<16x128xf32>
    %15 = tpu.matmul %12, %14, %cst_11 {dimension_numbers = #tpu.dot_dimension_numbers<[1], [0], [0], [1], [0, 0, 1, 1], [], []>} : vector<16x128xbf16>, vector<128x128xbf16>, vector<16x128xf32> -> vector<16x128xf32>
    %16 = arith.addf %8, %15 : vector<16x128xf32>
    %17 = arith.truncf %7 : vector<16x128xf32> to vector<16x128xbf16>
    %c1 = arith.constant 1 : index
    %c0_12 = arith.constant 0 : index
    %c0_13 = arith.constant 0 : index
    %18 = vector.load %arg4[%c1, %c0_12, %c0_13] : memref<3x128x128xbf16, #tpu.memory_space<vmem>>, vector<1x128x128xbf16>
    %19 = vector.shape_cast %18 : vector<1x128x128xbf16> to vector<128x128xbf16>
    %cst_14 = arith.constant dense<0.000000e+00> : vector<16x128xf32>
    %20 = tpu.matmul %17, %19, %cst_14 {dimension_numbers = #tpu.dot_dimension_numbers<[1], [0], [0], [1], [0, 0, 1, 1], [], []>} : vector<16x128xbf16>, vector<128x128xbf16>, vector<16x128xf32> -> vector<16x128xf32>
    %21 = arith.addf %16, %20 : vector<16x128xf32>
    %cst_15 = arith.constant 0.000000e+00 : f32
    %22 = vector.broadcast %cst_15 : f32 to vector<1x128xf32>
    %23 = vector.extract_strided_slice %7 {offsets = [1, 0], sizes = [15, 128], strides = [1, 1]} : vector<16x128xf32> to vector<15x128xf32>
    %24 = tpu.concatenate %23, %22 in 0 : vector<15x128xf32>, vector<1x128xf32> -> vector<16x128xf32>
    %25 = arith.truncf %24 : vector<16x128xf32> to vector<16x128xbf16>
    %c2 = arith.constant 2 : index
    %c0_16 = arith.constant 0 : index
    %c0_17 = arith.constant 0 : index
    %26 = vector.load %arg4[%c2, %c0_16, %c0_17] : memref<3x128x128xbf16, #tpu.memory_space<vmem>>, vector<1x128x128xbf16>
    %27 = vector.shape_cast %26 : vector<1x128x128xbf16> to vector<128x128xbf16>
    %cst_18 = arith.constant dense<0.000000e+00> : vector<16x128xf32>
    %28 = tpu.matmul %25, %27, %cst_18 {dimension_numbers = #tpu.dot_dimension_numbers<[1], [0], [0], [1], [0, 0, 1, 1], [], []>} : vector<16x128xbf16>, vector<128x128xbf16>, vector<16x128xf32> -> vector<16x128xf32>
    %29 = arith.addf %21, %28 : vector<16x128xf32>
    %c0_19 = arith.constant 0 : index
    %c0_20 = arith.constant 0 : index
    %30 = vector.load %arg5[%c0_19, %c0_20] : memref<1x128xf32, #tpu.memory_space<vmem>>, vector<1x128xf32>
    %31 = vector.broadcast %30 : vector<1x128xf32> to vector<16x128xf32>
    %32 = arith.addf %29, %31 : vector<16x128xf32>
    %cst_21 = arith.constant 0.000000e+00 : f32
    %33 = vector.broadcast %cst_21 : f32 to vector<16x128xf32>
    %34 = arith.maximumf %32, %33 : vector<16x128xf32>
    %cst_22 = arith.constant 0.000000e+00 : f32
    %35 = vector.broadcast %cst_22 : f32 to vector<16x128xf32>
    %cst_23 = arith.constant 0.000000e+00 : f32
    %36 = vector.broadcast %cst_23 : f32 to vector<1x128xf32>
    %37 = vector.extract_strided_slice %34 {offsets = [0, 0], sizes = [15, 128], strides = [1, 1]} : vector<16x128xf32> to vector<15x128xf32>
    %38 = tpu.concatenate %36, %37 in 0 : vector<1x128xf32>, vector<15x128xf32> -> vector<16x128xf32>
    %39 = arith.truncf %38 : vector<16x128xf32> to vector<16x128xbf16>
    %c0_24 = arith.constant 0 : index
    %c0_25 = arith.constant 0 : index
    %c0_26 = arith.constant 0 : index
    %40 = vector.load %arg6[%c0_24, %c0_25, %c0_26] : memref<3x128x128xbf16, #tpu.memory_space<vmem>>, vector<1x128x128xbf16>
    %41 = vector.shape_cast %40 : vector<1x128x128xbf16> to vector<128x128xbf16>
    %cst_27 = arith.constant dense<0.000000e+00> : vector<16x128xf32>
    %42 = tpu.matmul %39, %41, %cst_27 {dimension_numbers = #tpu.dot_dimension_numbers<[1], [0], [0], [1], [0, 0, 1, 1], [], []>} : vector<16x128xbf16>, vector<128x128xbf16>, vector<16x128xf32> -> vector<16x128xf32>
    %43 = arith.addf %35, %42 : vector<16x128xf32>
    %44 = arith.truncf %34 : vector<16x128xf32> to vector<16x128xbf16>
    %c1_28 = arith.constant 1 : index
    %c0_29 = arith.constant 0 : index
    %c0_30 = arith.constant 0 : index
    %45 = vector.load %arg6[%c1_28, %c0_29, %c0_30] : memref<3x128x128xbf16, #tpu.memory_space<vmem>>, vector<1x128x128xbf16>
    %46 = vector.shape_cast %45 : vector<1x128x128xbf16> to vector<128x128xbf16>
    %cst_31 = arith.constant dense<0.000000e+00> : vector<16x128xf32>
    %47 = tpu.matmul %44, %46, %cst_31 {dimension_numbers = #tpu.dot_dimension_numbers<[1], [0], [0], [1], [0, 0, 1, 1], [], []>} : vector<16x128xbf16>, vector<128x128xbf16>, vector<16x128xf32> -> vector<16x128xf32>
    %48 = arith.addf %43, %47 : vector<16x128xf32>
    %cst_32 = arith.constant 0.000000e+00 : f32
    %49 = vector.broadcast %cst_32 : f32 to vector<1x128xf32>
    %50 = vector.extract_strided_slice %34 {offsets = [1, 0], sizes = [15, 128], strides = [1, 1]} : vector<16x128xf32> to vector<15x128xf32>
    %51 = tpu.concatenate %50, %49 in 0 : vector<15x128xf32>, vector<1x128xf32> -> vector<16x128xf32>
    %52 = arith.truncf %51 : vector<16x128xf32> to vector<16x128xbf16>
    %c2_33 = arith.constant 2 : index
    %c0_34 = arith.constant 0 : index
    %c0_35 = arith.constant 0 : index
    %53 = vector.load %arg6[%c2_33, %c0_34, %c0_35] : memref<3x128x128xbf16, #tpu.memory_space<vmem>>, vector<1x128x128xbf16>
    %54 = vector.shape_cast %53 : vector<1x128x128xbf16> to vector<128x128xbf16>
    %cst_36 = arith.constant dense<0.000000e+00> : vector<16x128xf32>
    %55 = tpu.matmul %52, %54, %cst_36 {dimension_numbers = #tpu.dot_dimension_numbers<[1], [0], [0], [1], [0, 0, 1, 1], [], []>} : vector<16x128xbf16>, vector<128x128xbf16>, vector<16x128xf32> -> vector<16x128xf32>
    %56 = arith.addf %48, %55 : vector<16x128xf32>
    %c0_37 = arith.constant 0 : index
    %c0_38 = arith.constant 0 : index
    %57 = vector.load %arg7[%c0_37, %c0_38] : memref<1x128xf32, #tpu.memory_space<vmem>>, vector<1x128xf32>
    %58 = vector.broadcast %57 : vector<1x128xf32> to vector<16x128xf32>
    %59 = arith.addf %56, %58 : vector<16x128xf32>
    %cst_39 = arith.constant 0.000000e+00 : f32
    %60 = vector.broadcast %cst_39 : f32 to vector<16x128xf32>
    %61 = arith.maximumf %59, %60 : vector<16x128xf32>
    %cst_40 = arith.constant 0.000000e+00 : f32
    %62 = vector.broadcast %cst_40 : f32 to vector<16x64xf32>
    %cst_41 = arith.constant 0.000000e+00 : f32
    %63 = vector.broadcast %cst_41 : f32 to vector<1x128xf32>
    %64 = vector.extract_strided_slice %61 {offsets = [0, 0], sizes = [15, 128], strides = [1, 1]} : vector<16x128xf32> to vector<15x128xf32>
    %65 = tpu.concatenate %63, %64 in 0 : vector<1x128xf32>, vector<15x128xf32> -> vector<16x128xf32>
    %66 = arith.truncf %65 : vector<16x128xf32> to vector<16x128xbf16>
    %c0_42 = arith.constant 0 : index
    %c0_43 = arith.constant 0 : index
    %c0_44 = arith.constant 0 : index
    %67 = vector.load %arg8[%c0_42, %c0_43, %c0_44] : memref<4x128x64xbf16, #tpu.memory_space<vmem>>, vector<1x128x64xbf16>
    %68 = vector.shape_cast %67 : vector<1x128x64xbf16> to vector<128x64xbf16>
    %cst_45 = arith.constant dense<0.000000e+00> : vector<16x64xf32>
    %69 = tpu.matmul %66, %68, %cst_45 {dimension_numbers = #tpu.dot_dimension_numbers<[1], [0], [0], [1], [0, 0, 1, 1], [], []>} : vector<16x128xbf16>, vector<128x64xbf16>, vector<16x64xf32> -> vector<16x64xf32>
    %70 = arith.addf %62, %69 : vector<16x64xf32>
    %71 = arith.truncf %61 : vector<16x128xf32> to vector<16x128xbf16>
    %c1_46 = arith.constant 1 : index
    %c0_47 = arith.constant 0 : index
    %c0_48 = arith.constant 0 : index
    %72 = vector.load %arg8[%c1_46, %c0_47, %c0_48] : memref<4x128x64xbf16, #tpu.memory_space<vmem>>, vector<1x128x64xbf16>
    %73 = vector.shape_cast %72 : vector<1x128x64xbf16> to vector<128x64xbf16>
    %cst_49 = arith.constant dense<0.000000e+00> : vector<16x64xf32>
    %74 = tpu.matmul %71, %73, %cst_49 {dimension_numbers = #tpu.dot_dimension_numbers<[1], [0], [0], [1], [0, 0, 1, 1], [], []>} : vector<16x128xbf16>, vector<128x64xbf16>, vector<16x64xf32> -> vector<16x64xf32>
    %75 = arith.addf %70, %74 : vector<16x64xf32>
    %cst_50 = arith.constant 0.000000e+00 : f32
    %76 = vector.broadcast %cst_50 : f32 to vector<1x128xf32>
    %77 = vector.extract_strided_slice %61 {offsets = [1, 0], sizes = [15, 128], strides = [1, 1]} : vector<16x128xf32> to vector<15x128xf32>
    %78 = tpu.concatenate %77, %76 in 0 : vector<15x128xf32>, vector<1x128xf32> -> vector<16x128xf32>
    %79 = arith.truncf %78 : vector<16x128xf32> to vector<16x128xbf16>
    %c2_51 = arith.constant 2 : index
    %c0_52 = arith.constant 0 : index
    %c0_53 = arith.constant 0 : index
    %80 = vector.load %arg8[%c2_51, %c0_52, %c0_53] : memref<4x128x64xbf16, #tpu.memory_space<vmem>>, vector<1x128x64xbf16>
    %81 = vector.shape_cast %80 : vector<1x128x64xbf16> to vector<128x64xbf16>
    %cst_54 = arith.constant dense<0.000000e+00> : vector<16x64xf32>
    %82 = tpu.matmul %79, %81, %cst_54 {dimension_numbers = #tpu.dot_dimension_numbers<[1], [0], [0], [1], [0, 0, 1, 1], [], []>} : vector<16x128xbf16>, vector<128x64xbf16>, vector<16x64xf32> -> vector<16x64xf32>
    %83 = arith.addf %75, %82 : vector<16x64xf32>
    %cst_55 = arith.constant 0.000000e+00 : f32
    %84 = vector.broadcast %cst_55 : f32 to vector<2x128xf32>
    %85 = vector.extract_strided_slice %61 {offsets = [2, 0], sizes = [14, 128], strides = [1, 1]} : vector<16x128xf32> to vector<14x128xf32>
    %86 = tpu.concatenate %85, %84 in 0 : vector<14x128xf32>, vector<2x128xf32> -> vector<16x128xf32>
    %87 = arith.truncf %86 : vector<16x128xf32> to vector<16x128xbf16>
    %c3 = arith.constant 3 : index
    %c0_56 = arith.constant 0 : index
    %c0_57 = arith.constant 0 : index
    %88 = vector.load %arg8[%c3, %c0_56, %c0_57] : memref<4x128x64xbf16, #tpu.memory_space<vmem>>, vector<1x128x64xbf16>
    %89 = vector.shape_cast %88 : vector<1x128x64xbf16> to vector<128x64xbf16>
    %cst_58 = arith.constant dense<0.000000e+00> : vector<16x64xf32>
    %90 = tpu.matmul %87, %89, %cst_58 {dimension_numbers = #tpu.dot_dimension_numbers<[1], [0], [0], [1], [0, 0, 1, 1], [], []>} : vector<16x128xbf16>, vector<128x64xbf16>, vector<16x64xf32> -> vector<16x64xf32>
    %91 = arith.addf %83, %90 : vector<16x64xf32>
    %c0_59 = arith.constant 0 : index
    %c0_60 = arith.constant 0 : index
    %92 = vector.load %arg9[%c0_59, %c0_60] : memref<1x64xf32, #tpu.memory_space<vmem>>, vector<1x64xf32>
    %93 = vector.broadcast %92 : vector<1x64xf32> to vector<16x64xf32>
    %94 = arith.addf %91, %93 : vector<16x64xf32>
    %cst_61 = arith.constant 0.000000e+00 : f32
    %95 = vector.broadcast %cst_61 : f32 to vector<16x64xf32>
    %96 = arith.maximumf %94, %95 : vector<16x64xf32>
    %cst_62 = arith.constant 0.000000e+00 : f32
    %97 = vector.broadcast %cst_62 : f32 to vector<1x128xf32>
    %98 = vector.extract_strided_slice %96 {offsets = [0, 0], sizes = [1, 64], strides = [1, 1]} : vector<16x64xf32> to vector<1x64xf32>
    %99 = arith.truncf %98 : vector<1x64xf32> to vector<1x64xbf16>
    %c0_63 = arith.constant 0 : index
    %c0_64 = arith.constant 0 : index
    %c0_65 = arith.constant 0 : index
    %100 = vector.load %arg10[%c0_63, %c0_64, %c0_65] : memref<8x64x128xbf16, #tpu.memory_space<vmem>>, vector<1x64x128xbf16>
    %101 = vector.shape_cast %100 : vector<1x64x128xbf16> to vector<64x128xbf16>
    %cst_66 = arith.constant dense<0.000000e+00> : vector<1x128xf32>
    %102 = tpu.matmul %99, %101, %cst_66 {dimension_numbers = #tpu.dot_dimension_numbers<[1], [0], [0], [1], [0, 0, 1, 1], [], []>} : vector<1x64xbf16>, vector<64x128xbf16>, vector<1x128xf32> -> vector<1x128xf32>
    %103 = arith.addf %97, %102 : vector<1x128xf32>
    %104 = vector.extract_strided_slice %96 {offsets = [2, 0], sizes = [1, 64], strides = [1, 1]} : vector<16x64xf32> to vector<1x64xf32>
    %105 = arith.truncf %104 : vector<1x64xf32> to vector<1x64xbf16>
    %c1_67 = arith.constant 1 : index
    %c0_68 = arith.constant 0 : index
    %c0_69 = arith.constant 0 : index
    %106 = vector.load %arg10[%c1_67, %c0_68, %c0_69] : memref<8x64x128xbf16, #tpu.memory_space<vmem>>, vector<1x64x128xbf16>
    %107 = vector.shape_cast %106 : vector<1x64x128xbf16> to vector<64x128xbf16>
    %cst_70 = arith.constant dense<0.000000e+00> : vector<1x128xf32>
    %108 = tpu.matmul %105, %107, %cst_70 {dimension_numbers = #tpu.dot_dimension_numbers<[1], [0], [0], [1], [0, 0, 1, 1], [], []>} : vector<1x64xbf16>, vector<64x128xbf16>, vector<1x128xf32> -> vector<1x128xf32>
    %109 = arith.addf %103, %108 : vector<1x128xf32>
    %110 = vector.extract_strided_slice %96 {offsets = [4, 0], sizes = [1, 64], strides = [1, 1]} : vector<16x64xf32> to vector<1x64xf32>
    %111 = arith.truncf %110 : vector<1x64xf32> to vector<1x64xbf16>
    %c2_71 = arith.constant 2 : index
    %c0_72 = arith.constant 0 : index
    %c0_73 = arith.constant 0 : index
    %112 = vector.load %arg10[%c2_71, %c0_72, %c0_73] : memref<8x64x128xbf16, #tpu.memory_space<vmem>>, vector<1x64x128xbf16>
    %113 = vector.shape_cast %112 : vector<1x64x128xbf16> to vector<64x128xbf16>
    %cst_74 = arith.constant dense<0.000000e+00> : vector<1x128xf32>
    %114 = tpu.matmul %111, %113, %cst_74 {dimension_numbers = #tpu.dot_dimension_numbers<[1], [0], [0], [1], [0, 0, 1, 1], [], []>} : vector<1x64xbf16>, vector<64x128xbf16>, vector<1x128xf32> -> vector<1x128xf32>
    %115 = arith.addf %109, %114 : vector<1x128xf32>
    %116 = vector.extract_strided_slice %96 {offsets = [6, 0], sizes = [1, 64], strides = [1, 1]} : vector<16x64xf32> to vector<1x64xf32>
    %117 = arith.truncf %116 : vector<1x64xf32> to vector<1x64xbf16>
    %c3_75 = arith.constant 3 : index
    %c0_76 = arith.constant 0 : index
    %c0_77 = arith.constant 0 : index
    %118 = vector.load %arg10[%c3_75, %c0_76, %c0_77] : memref<8x64x128xbf16, #tpu.memory_space<vmem>>, vector<1x64x128xbf16>
    %119 = vector.shape_cast %118 : vector<1x64x128xbf16> to vector<64x128xbf16>
    %cst_78 = arith.constant dense<0.000000e+00> : vector<1x128xf32>
    %120 = tpu.matmul %117, %119, %cst_78 {dimension_numbers = #tpu.dot_dimension_numbers<[1], [0], [0], [1], [0, 0, 1, 1], [], []>} : vector<1x64xbf16>, vector<64x128xbf16>, vector<1x128xf32> -> vector<1x128xf32>
    %121 = arith.addf %115, %120 : vector<1x128xf32>
    %122 = vector.extract_strided_slice %96 {offsets = [8, 0], sizes = [1, 64], strides = [1, 1]} : vector<16x64xf32> to vector<1x64xf32>
    %123 = arith.truncf %122 : vector<1x64xf32> to vector<1x64xbf16>
    %c4 = arith.constant 4 : index
    %c0_79 = arith.constant 0 : index
    %c0_80 = arith.constant 0 : index
    %124 = vector.load %arg10[%c4, %c0_79, %c0_80] : memref<8x64x128xbf16, #tpu.memory_space<vmem>>, vector<1x64x128xbf16>
    %125 = vector.shape_cast %124 : vector<1x64x128xbf16> to vector<64x128xbf16>
    %cst_81 = arith.constant dense<0.000000e+00> : vector<1x128xf32>
    %126 = tpu.matmul %123, %125, %cst_81 {dimension_numbers = #tpu.dot_dimension_numbers<[1], [0], [0], [1], [0, 0, 1, 1], [], []>} : vector<1x64xbf16>, vector<64x128xbf16>, vector<1x128xf32> -> vector<1x128xf32>
    %127 = arith.addf %121, %126 : vector<1x128xf32>
    %128 = vector.extract_strided_slice %96 {offsets = [10, 0], sizes = [1, 64], strides = [1, 1]} : vector<16x64xf32> to vector<1x64xf32>
    %129 = arith.truncf %128 : vector<1x64xf32> to vector<1x64xbf16>
    %c5 = arith.constant 5 : index
    %c0_82 = arith.constant 0 : index
    %c0_83 = arith.constant 0 : index
    %130 = vector.load %arg10[%c5, %c0_82, %c0_83] : memref<8x64x128xbf16, #tpu.memory_space<vmem>>, vector<1x64x128xbf16>
    %131 = vector.shape_cast %130 : vector<1x64x128xbf16> to vector<64x128xbf16>
    %cst_84 = arith.constant dense<0.000000e+00> : vector<1x128xf32>
    %132 = tpu.matmul %129, %131, %cst_84 {dimension_numbers = #tpu.dot_dimension_numbers<[1], [0], [0], [1], [0, 0, 1, 1], [], []>} : vector<1x64xbf16>, vector<64x128xbf16>, vector<1x128xf32> -> vector<1x128xf32>
    %133 = arith.addf %127, %132 : vector<1x128xf32>
    %134 = vector.extract_strided_slice %96 {offsets = [12, 0], sizes = [1, 64], strides = [1, 1]} : vector<16x64xf32> to vector<1x64xf32>
    %135 = arith.truncf %134 : vector<1x64xf32> to vector<1x64xbf16>
    %c6 = arith.constant 6 : index
    %c0_85 = arith.constant 0 : index
    %c0_86 = arith.constant 0 : index
    %136 = vector.load %arg10[%c6, %c0_85, %c0_86] : memref<8x64x128xbf16, #tpu.memory_space<vmem>>, vector<1x64x128xbf16>
    %137 = vector.shape_cast %136 : vector<1x64x128xbf16> to vector<64x128xbf16>
    %cst_87 = arith.constant dense<0.000000e+00> : vector<1x128xf32>
    %138 = tpu.matmul %135, %137, %cst_87 {dimension_numbers = #tpu.dot_dimension_numbers<[1], [0], [0], [1], [0, 0, 1, 1], [], []>} : vector<1x64xbf16>, vector<64x128xbf16>, vector<1x128xf32> -> vector<1x128xf32>
    %139 = arith.addf %133, %138 : vector<1x128xf32>
    %140 = vector.extract_strided_slice %96 {offsets = [14, 0], sizes = [1, 64], strides = [1, 1]} : vector<16x64xf32> to vector<1x64xf32>
    %141 = arith.truncf %140 : vector<1x64xf32> to vector<1x64xbf16>
    %c7 = arith.constant 7 : index
    %c0_88 = arith.constant 0 : index
    %c0_89 = arith.constant 0 : index
    %142 = vector.load %arg10[%c7, %c0_88, %c0_89] : memref<8x64x128xbf16, #tpu.memory_space<vmem>>, vector<1x64x128xbf16>
    %143 = vector.shape_cast %142 : vector<1x64x128xbf16> to vector<64x128xbf16>
    %cst_90 = arith.constant dense<0.000000e+00> : vector<1x128xf32>
    %144 = tpu.matmul %141, %143, %cst_90 {dimension_numbers = #tpu.dot_dimension_numbers<[1], [0], [0], [1], [0, 0, 1, 1], [], []>} : vector<1x64xbf16>, vector<64x128xbf16>, vector<1x128xf32> -> vector<1x128xf32>
    %145 = arith.addf %139, %144 : vector<1x128xf32>
    %c0_91 = arith.constant 0 : index
    %c0_92 = arith.constant 0 : index
    %146 = vector.load %arg11[%c0_91, %c0_92] : memref<1x128xf32, #tpu.memory_space<vmem>>, vector<1x128xf32>
    %147 = arith.addf %145, %146 : vector<1x128xf32>
    %cst_93 = arith.constant 0.000000e+00 : f32
    %148 = vector.broadcast %cst_93 : f32 to vector<1x128xf32>
    %149 = arith.maximumf %147, %148 : vector<1x128xf32>
    %150 = arith.truncf %149 : vector<1x128xf32> to vector<1x128xbf16>
    %c0_94 = arith.constant 0 : index
    %c0_95 = arith.constant 0 : index
    %151 = vector.load %arg12[%c0_94, %c0_95] : memref<128x128xbf16, #tpu.memory_space<vmem>>, vector<128x128xbf16>
    %cst_96 = arith.constant dense<0.000000e+00> : vector<1x128xf32>
    %152 = tpu.matmul %150, %151, %cst_96 {dimension_numbers = #tpu.dot_dimension_numbers<[1], [0], [0], [1], [0, 0, 1, 1], [], []>} : vector<1x128xbf16>, vector<128x128xbf16>, vector<1x128xf32> -> vector<1x128xf32>
    %c0_97 = arith.constant 0 : index
    %c0_98 = arith.constant 0 : index
    %153 = vector.load %arg13[%c0_97, %c0_98] : memref<1x128xf32, #tpu.memory_space<vmem>>, vector<1x128xf32>
    %154 = arith.addf %152, %153 : vector<1x128xf32>
    %c0_99 = arith.constant 0 : index
    %c0_100 = arith.constant 0 : index
    %c0_101 = arith.constant 0 : index
    %155 = vector.load %arg14[%c0_99, %c0_100, %c0_101] : memref<1x1x128xf32, #tpu.memory_space<vmem>>, vector<1x1x128xf32>
    %156 = vector.shape_cast %155 : vector<1x1x128xf32> to vector<1x128xf32>
    %157 = vector.shape_cast %154 : vector<1x128xf32> to vector<1x1x128xf32>
    tpu.vector_store %arg14[%c0_99, %c0_100, %c0_101], %157 {strides = array<i32>} : memref<1x1x128xf32, #tpu.memory_space<vmem>>, vector<1x1x128xf32>,
    return
  }
  func.func @transform_0(%arg0: i32) -> (i32, i32) {
    %c0_i32 = arith.constant 0 : i32
    %c0_i32_0 = arith.constant 0 : i32
    return %arg0, %c0_i32 : i32, i32
  }
  func.func @transform_1(%arg0: i32) -> (i32, i32) {
    %c0_i32 = arith.constant 0 : i32
    %c0_i32_0 = arith.constant 0 : i32
    %c0_i32_1 = arith.constant 0 : i32
    return %c0_i32, %c0_i32_0 : i32, i32
  }
  func.func @transform_2(%arg0: i32) -> (i32, i32) {
    %c0_i32 = arith.constant 0 : i32
    %c0_i32_0 = arith.constant 0 : i32
    %c0_i32_1 = arith.constant 0 : i32
    return %c0_i32, %c0_i32_0 : i32, i32
  }
  func.func @transform_3(%arg0: i32) -> (i32, i32, i32) {
    %c0_i32 = arith.constant 0 : i32
    %c0_i32_0 = arith.constant 0 : i32
    %c0_i32_1 = arith.constant 0 : i32
    %c0_i32_2 = arith.constant 0 : i32
    return %c0_i32, %c0_i32_0, %c0_i32_1 : i32, i32, i32
  }
  func.func @transform_4(%arg0: i32) -> (i32, i32) {
    %c0_i32 = arith.constant 0 : i32
    %c0_i32_0 = arith.constant 0 : i32
    %c0_i32_1 = arith.constant 0 : i32
    return %c0_i32, %c0_i32_0 : i32, i32
  }
  func.func @transform_5(%arg0: i32) -> (i32, i32, i32) {
    %c0_i32 = arith.constant 0 : i32
    %c0_i32_0 = arith.constant 0 : i32
    %c0_i32_1 = arith.constant 0 : i32
    %c0_i32_2 = arith.constant 0 : i32
    return %c0_i32, %c0_i32_0, %c0_i32_1 : i32, i32, i32
  }
  func.func @transform_6(%arg0: i32) -> (i32, i32) {
    %c0_i32 = arith.constant 0 : i32
    %c0_i32_0 = arith.constant 0 : i32
    %c0_i32_1 = arith.constant 0 : i32
    return %c0_i32, %c0_i32_0 : i32, i32
  }
  func.func @transform_7(%arg0: i32) -> (i32, i32, i32) {
    %c0_i32 = arith.constant 0 : i32
    %c0_i32_0 = arith.constant 0 : i32
    %c0_i32_1 = arith.constant 0 : i32
    %c0_i32_2 = arith.constant 0 : i32
    return %c0_i32, %c0_i32_0, %c0_i32_1 : i32, i32, i32
  }
  func.func @transform_8(%arg0: i32) -> (i32, i32) {
    %c0_i32 = arith.constant 0 : i32
    %c0_i32_0 = arith.constant 0 : i32
    %c0_i32_1 = arith.constant 0 : i32
    return %c0_i32, %c0_i32_0 : i32, i32
  }
  func.func @transform_9(%arg0: i32) -> (i32, i32, i32) {
    %c0_i32 = arith.constant 0 : i32
    %c0_i32_0 = arith.constant 0 : i32
    %c0_i32_1 = arith.constant 0 : i32
    %c0_i32_2 = arith.constant 0 : i32
    return %c0_i32, %c0_i32_0, %c0_i32_1 : i32, i32, i32
  }
  func.func @transform_10(%arg0: i32) -> (i32, i32) {
    %c0_i32 = arith.constant 0 : i32
    %c0_i32_0 = arith.constant 0 : i32
    %c0_i32_1 = arith.constant 0 : i32
    return %c0_i32, %c0_i32_0 : i32, i32
  }
  func.func @transform_11(%arg0: i32) -> (i32, i32) {
    %c0_i32 = arith.constant 0 : i32
    %c0_i32_0 = arith.constant 0 : i32
    %c0_i32_1 = arith.constant 0 : i32
    return %c0_i32, %c0_i32_0 : i32, i32
  }
  func.func @transform_12(%arg0: i32) -> (i32, i32) {
    %c0_i32 = arith.constant 0 : i32
    %c0_i32_0 = arith.constant 0 : i32
    %c0_i32_1 = arith.constant 0 : i32
    return %c0_i32, %c0_i32_0 : i32, i32
  }
  func.func @transform_13(%arg0: i32) -> (i32, i32, i32) {
    %c0_i32 = arith.constant 0 : i32
    %c0_i32_0 = arith.constant 0 : i32
    %c0_i32_1 = arith.constant 0 : i32
    return %arg0, %c0_i32, %c0_i32_0 : i32, i32, i32
  }
}

</mosaic_0001>

<bundles_post_ra>
// kernel: forward.1
= control target key start
LH: loop header
LB: loop body
LE: loop exit
PB: predicated region body
PF: predicated region fallthrough
CT: control target
= control target key end

     0   :  { %18 = vsyncpa [#allocation3], 0  ;;  %s4768_s0 = inlined_call_operand.vmem [shape: bf16[32,512], index: 0, kind: input, shape index: {}]   ;;  %s4769_s1 = inlined_call_operand.vmem [shape: bf16[512,128], index: 1, kind: input, shape index: {}]   ;;  %s4770_s2 = inlined_call_operand.vmem [shape: f32[1,128], index: 2, kind: input, shape index: {}]   ;;  %s4771_s3 = inlined_call_operand.vmem [shape: bf16[3,128,128], index: 3, kind: input, shape index: {}]   ;;  %s4772_s4 = inlined_call_operand.vmem [shape: f32[1,128], index: 4, kind: input, shape index: {}]   ;;  %s4773_s5 = inlined_call_operand.vmem [shape: bf16[3,128,128], index: 5, kind: input, shape index: {}]   ;;  %s4774_s6 = inlined_call_operand.vmem [shape: f32[1,128], index: 6, kind: input, shape index: {}]   ;;  %s4775_s7 = inlined_call_operand.vmem [shape: bf16[4,128,64], index: 7, kind: input, shape index: {}]   ;;  %s4776_s8 = inlined_call_operand.vmem [shape: f32[1,64], index: 8, kind: input, shape index: {}]   ;;  %s4777_s9 = inlined_call_operand.vmem [shape: bf16[8,64,128], index: 9, kind: input, shape index: {}]   ;;  %s4778_s10 = inlined_call_operand.vmem [shape: f32[1,128], index: 10, kind: input, shape index: {}]   ;;  %s4779_s11 = inlined_call_operand.vmem [shape: bf16[128,128], index: 11, kind: input, shape index: {}]   ;;  %s4780_s12 = inlined_call_operand.vmem [shape: f32[1,128], index: 12, kind: input, shape index: {}]   ;;  %s4781_s13 = inlined_call_operand.hbm [shape: f32[2,1,128], index: 13, kind: output, shape index: {}]  }
   0x1   :  { %20 = vsyncpa [#allocation3 + $0x1], 0  ;;  %s3984_s25 = smov 0   ;;  %s3986_s26 = smov 0  }
   0x2   :  { %s3988_s27 = smov 0   ;;  %s3990_s28 = smov 0  }
   0x3 LB: > { %4786 = sst [smem:[#allocation5_spill]] %s3904_s27  ;;  %s4005_s29 = sadd.s32 4294967295, %s3908_s28   ;;  %s3908_s28 = sphi %s3990_s28, %s4797_s28   ;;  %s3904_s27 = sphi %s3988_s27, %s4802_s27   ;;  %s3900_s26 = sphi %s3986_s26, %s4801_s26   ;;  %s3896_s25 = sphi %s3984_s25, %s4800_s25  }
   0x4   : > { %s2776_s30 = sadd.s32 4294967294, %s3908_s28   ;;  %s4009_s14 = sadd.s32 1, %s3908_s28  }
   0x5   : > { %4787 = sst [smem:[#allocation6_spill]] %s4009_s14  ;;  %s311_s15 = sadd.s32 1, %s3904_s27 }
   0x6   : > { %s308_s16 = ssub.s32 %s3908_s28, %s4009_s14  ;;  %p321_p0 = scmp.ne.s32.totalorder %s3904_s27, %s3900_s26 }
   0x7   : > { %p309_p1 = scmp.eq.s32.totalorder %s308_s16, 0  ;;  %p322_p2 = scmp.eq.s32.totalorder %s4005_s29, 1 }
   0x8   : > { %p327_p3 = scmp.ne.s32.totalorder %s3900_s26, %s3896_s25  ;;  %p328_p4 = scmp.eq.s32.totalorder %s2776_s30, 1 }
   0x9   : > { %s4020_s17 = scalar_select %p309_p1, %s3904_s27, %s311_s15  }
   0xa   : > { %p4022_p5 = por %p322_p2, %p321_p0  ;;  %p4026_p6 = por %p328_p4, %p327_p3 }
   0xb   : > { %4788 = sst [smem:[#allocation7_spill]] %s4020_s17  ;;  %p2779_p7 = scmp.ge.s32.totalorder %s3908_s28, 1 }
   0xc   : > { %s4790_s19 = scalar_select %p4026_p6, 1, 0 }
   0xd   : > { %p392_p8 = scmp.lt.s32.totalorder %s3908_s28, 3 }
   0xe   : > { %4791 = sst [smem:[#allocation8_spill]] %s4790_s19 }
   0xf   : > { %p393_p9 = pnand %p2779_p7, %p392_p8 }
  0x10   : > { %v3688_v0 = vld [vmem:[%s4769_s1 + $0x40] sm:$0xff] (!%p393_p9)   ;;  %v3692_v4 = vld [vmem:[%s4769_s1 + $0x48] sm:$0xff] (!%p393_p9)   ;;  %v3696_v8 = vld [vmem:[%s4769_s1 + $0x50] sm:$0xff] (!%p393_p9)   ;;  %s2780_s22 = sshll.u32 (!%p393_p9), %s4005_s29, 1  ;;  %v3910_v34 = vmov (!%p393_p9), 0.0   ;;  %vm3911_vm0 = vmmov (!%p393_p9), 0  }
  0x11   : > { %396 = sbr.rel (%p393_p9) target bundleno = 1552 (0x610), region = 72  ;;  %v3689_v1 = vld [vmem:[%s4769_s1 + $0xc0] sm:$0xff] (!%p393_p9)   ;;  %3147 = vmatprep.subr.bf16.mxu0 (!%p393_p9), %v3688_v0  ;;  %v3693_v5 = vld [vmem:[%s4769_s1 + $0xc8] sm:$0xff] (!%p393_p9)   ;;  %v3697_v9 = vld [vmem:[%s4769_s1 + $0xd0] sm:$0xff] (!%p393_p9)   ;;  %p437_p10 = scmp.lt.s32.totalorder (!%p393_p9), %s2780_s22, 3  ;;  %vm817_vm1 = vcmask (!%p393_p9), 1040384  }
  0x12   : > { %v3690_v2 = vld [vmem:[%s4769_s1] sm:$0xff] (!%p393_p9)   ;;  %3169 = vmatprep.subr.bf16.mxu1 (!%p393_p9), %v3689_v1  ;;  %v3694_v6 = vld [vmem:[%s4769_s1 + $0x8] sm:$0xff] (!%p393_p9)   ;;  %v3698_v10 = vld [vmem:[%s4769_s1 + $0x10] sm:$0xff] (!%p393_p9)   ;;  %vm1037_vm2 = vcmask (!%p393_p9), 1046528   ;;  %vm3912_vm4 = vmmov (!%p393_p9), 1   ;;  %vm1847_vm7 = vcmask (!%p393_p9), 1045504  }
  0x13   : > { %v3691_v3 = vld [vmem:[%s4769_s1 + $0x80] sm:$0xff] (!%p393_p9)   ;;  %3148 = vmatpush3.bf16.msra.mxu0 (!%p393_p9), %v3690_v2  ;;  %v3695_v7 = vld [vmem:[%s4769_s1 + $0x88] sm:$0xff] (!%p393_p9)   ;;  %v3699_v11 = vld [vmem:[%s4769_s1 + $0x90] sm:$0xff] (!%p393_p9)   ;;  %vm2018_vm9 = vcmask (!%p393_p9), 523264   ;;  %s434_s14 = sand.u32 (!%p393_p9), 1, %s3900_s26  }
  0x14   : > { %3170 = vmatpush3.bf16.msra.mxu1 (!%p393_p9), %v3691_v3  ;;  %3149 = vmatprep.subr.bf16.mxu0 (!%p393_p9), %v3692_v4  ;;  %v3700_v12 = vld [vmem:[%s4769_s1 + $0x58] sm:$0xff] (!%p393_p9)   ;;  %v3704_v16 = vld [vmem:[%s4769_s1 + $0x60] sm:$0xff] (!%p393_p9)   ;;  %v3708_v20 = vld [vmem:[%s4769_s1 + $0x68] sm:$0xff] (!%p393_p9)   ;;  %s435_s17 = scalar_lea.vmem (!%p393_p9), [#allocation2], %s434_s14 }
  0x15   : > { %3171 = vmatprep.subr.bf16.mxu1 (!%p393_p9), %v3693_v5  ;;  %v3701_v13 = vld [vmem:[%s4769_s1 + $0xd8] sm:$0xff] (!%p393_p9)   ;;  %v3705_v17 = vld [vmem:[%s4769_s1 + $0xe0] sm:$0xff] (!%p393_p9)   ;;  %v3709_v21 = vld [vmem:[%s4769_s1 + $0xe8] sm:$0xff] (!%p393_p9)   ;;  %s2721_s20 = sshll.u32 (!%p393_p9), %s435_s17, 4  ;;  %s4728_s20 = int_to_ptr.vmem [resolvable:$true] %s2721_s20 }
  0x16   : > { %v3702_v14 = vld [vmem:[%s4769_s1 + $0x18] sm:$0xff] (!%p393_p9)   ;;  %v3706_v18 = vld [vmem:[%s4769_s1 + $0x20] sm:$0xff] (!%p393_p9)   ;;  %v3710_v22 = vld [vmem:[%s4769_s1 + $0x28] sm:$0xff] (!%p393_p9)  }
  0x17   : > { %3150 = vmatpush3.bf16.msra.mxu0 (!%p393_p9), %v3694_v6  ;;  %v3703_v15 = vld [vmem:[%s4769_s1 + $0x98] sm:$0xff] (!%p393_p9)   ;;  %v3707_v19 = vld [vmem:[%s4769_s1 + $0xa0] sm:$0xff] (!%p393_p9)   ;;  %v3711_v23 = vld [vmem:[%s4769_s1 + $0xa8] sm:$0xff] (!%p393_p9)  }
  0x18   : > { %3172 = vmatpush3.bf16.msra.mxu1 %v3695_v7  ;;  %3151 = vmatprep.subr.bf16.mxu0 %v3696_v8  ;;  %s4804_s22 = smov (!%p437_p10, %s2780_s22), 3  ;;  %v3712_v24 = vld [vmem:[%s4769_s1 + $0x70] sm:$0xff]   ;;  %v3716_v28 = vld [vmem:[%s4769_s1 + $0x78] sm:$0xff]   ;;  %v3726_v37 = vld [vmem:[%s4771_s3 + $0x40] sm:$0xff]  }
  0x19   : > { %3173 = vmatprep.subr.bf16.mxu1 %v3697_v9  ;;  %v3713_v25 = vld [vmem:[%s4769_s1 + $0xf0] sm:$0xff]   ;;  %s3146_s16 = sshll.u32 %s4804_s22, 4  ;;  %v3717_v29 = vld [vmem:[%s4769_s1 + $0xf8] sm:$0xff]   ;;  %v3727_v38 = vld [vmem:[%s4771_s3 + $0x48] sm:$0xff]   ;;  %s3913_s22 = smov [#allocation2]  }
  0x1a   : > { %v3714_v26 = vld [vmem:[%s4769_s1 + $0x30] sm:$0xff]   ;;  %s441_s30 = scalar_lea.vmem %s4768_s0, %s3146_s16  ;;  %v3718_v30 = vld [vmem:[%s4769_s1 + $0x38] sm:$0xff]   ;;  %v3728_v39 = vld [vmem:[%s4771_s3] sm:$0xff]   ;;  %s3143_s16 = sshll.u32 %s4005_s29, 4 }
  0x1b   : > { %3152 = vmatpush3.bf16.msra.mxu0 %v3698_v10  ;;  %v3715_v27 = vld [vmem:[%s4769_s1 + $0xb0] sm:$0xff]   ;;  %v3719_v31 = vld [vmem:[%s4769_s1 + $0xb8] sm:$0xff]   ;;  %v3730_v40 = vld [vmem:[%s4771_s3 + $0x8] sm:$0xff]   ;;  %s4726_s24 = scalar_lea.hbm %s4781_s13, %s3143_s16  ;;  %s3846_s29 = scalar_lea.vmem %s4728_s20, 16 }
  0x1c   : > { %3174 = vmatpush3.bf16.msra.mxu1 %v3699_v11  ;;  %3153 = vmatprep.subr.bf16.mxu0 %v3700_v12  ;;  %v3720_v32 = vld [vmem:[%s441_s30] ss:$16 sps:$4 sm:$0xff]   ;;  %v3722_v33 = vld [vmem:[%s441_s30 + $0x4] ss:$16 sps:$4 sm:$0xff]   ;;  %v3723_v35 = vld [vmem:[%s441_s30 + $0x8] ss:$16 sps:$4 sm:$0xff]   ;;  %p3847_p11 = scmp.ne.s32.totalorder %s4728_s20, %s3846_s29 }
  0x1d   : > { %3175 = vmatprep.subr.bf16.mxu1 %v3701_v13  ;;  %v3725_v36 = vld [vmem:[%s441_s30 + $0xc] ss:$16 sps:$4 sm:$0xff]   ;;  %763 = vmatprep.mubr.bf16.mxu0 %v3722_v33  ;;  %v3729_v41 = vld [vmem:[%s4771_s3 + $0x50] sm:$0xff]   ;;  %v3733_v45 = vld [vmem:[%s4771_s3 + $0x60] sm:$0xff]   ;;  %s2709_s30 = scalar_lea.sflag [#allocation3], %s434_s14  ;;  %s3850_s15 = sshll.u32 %s3913_s22, 4  ;;  %s3851_s15 = int_to_ptr.vmem [resolvable:$false] %s3850_s15 }
  0x1e   : > { %804 = vmatprep.mubr.bf16.mxu1 %v3725_v36  ;;  %v3731_v42 = vld [vmem:[%s4771_s3 + $0x58] sm:$0xff]   ;;  %v3732_v43 = vld [vmem:[%s4771_s3 + $0x10] sm:$0xff]   ;;  %v3735_v46 = vld [vmem:[%s4771_s3 + $0x68] sm:$0xff]   ;;  %p3848_p12 = pnand %p3847_p11, %p4022_p5  ;;  %s3852_s27 = scalar_lea.vmem %s3851_s15, 32 }
  0x1f   : > { %3154 = vmatpush3.bf16.msra.mxu0 %v3702_v14  ;;  %v3734_v44 = vld [vmem:[%s4771_s3 + $0x18] sm:$0xff]   ;;  %v3736_v47 = vld [vmem:[%s4771_s3 + $0x20] sm:$0xff]   ;;  %v3737_v48 = vld [vmem:[%s4771_s3 + $0x70] sm:$0xff]   ;;  %p3853_p0 = scmp.lt.s32.totalorder %s4728_s20, %s3851_s15  ;;  %p3854_p1 = scmp.lt.s32.totalorder %s3852_s27, %s3846_s29 }
  0x20   : > { %3176 = vmatpush3.bf16.msra.mxu1 %v3703_v15  ;;  %3155 = vmatprep.subr.bf16.mxu0 %v3704_v16  ;;  %v3738_v49 = vld [vmem:[%s4771_s3 + $0x28] sm:$0xff]   ;;  %v3739_v50 = vld [vmem:[%s4771_s3 + $0x78] sm:$0xff]   ;;  %v3740_v51 = vld [vmem:[%s4771_s3 + $0x30] sm:$0xff]   ;;  %p3849_p13 = pneg %p3848_p12 }
  0x21   : > { %3177 = vmatprep.subr.bf16.mxu1 %v3705_v17  ;;  %v3741_v52 = vld [vmem:[%s4771_s3 + $0x38] sm:$0xff]   ;;  %v2783_v55 = vld [vmem:[%s4770_s2] ss:$0 sm:$0xff]  ;;  %vm2852_vm3 = vmneg %vm817_vm1  ;;  %p3855_p2 = por %p3854_p1, %p3853_p0 }
  0x22   : > { %v3742_v9 = vld [vmem:[%s4771_s3 + $0x80] sm:$0xff]   ;;  %vm4212_vm5 = vmpackc.low %vm3912_vm4, %vm2852_vm3  ;;  %v3755_v33 = vld [vmem:[%s4773_s5 + $0x58] sm:$0xff]  }
  0x23   : > { %3156 = vmatpush3.bf16.msra.mxu0 %v3706_v18  ;;  %vm4252_vm6 = vmpackc.low %vm1037_vm2, %vm3912_vm4  ;;  %v3757_v36 = vld [vmem:[%s4773_s5 + $0x60] sm:$0xff]   ;;  %v3795_v16 = vld [vmem:[%s4775_s7 + $0xd0] sm:$0xff]   ;;  %p3856_p3 = pnand %p3855_p2, %p3849_p13 }
  0x24   : > { %3178 = vmatpush3.bf16.msra.mxu1 %v3707_v19  ;;  %3157 = vmatprep.subr.bf16.mxu0 %v3708_v20  ;;  %v3743_v19 = vld [vmem:[%s4771_s3 + $0x88] sm:$0xff]   ;;  %v3744_v20 = vld [vmem:[%s4771_s3 + $0x90] sm:$0xff]   ;;  %vm3035_vm8 = vmpackc.low %vm1847_vm7, %vm3912_vm4 }
  0x25   : > { %3179 = vmatprep.subr.bf16.mxu1 %v3709_v21  ;;  %v3745_v21 = vld [vmem:[%s4771_s3 + $0x98] sm:$0xff]  }
  0x27   : > { %3158 = vmatpush3.bf16.msra.mxu0 %v3710_v22  ;;  %v3746_v22 = vld [vmem:[%s4771_s3 + $0xa0] sm:$0xff]  }
  0x28   : > { %3180 = vmatpush3.bf16.msra.mxu1 %v3711_v23  ;;  %3159 = vmatprep.subr.bf16.mxu0 %v3712_v24  ;;  %v3747_v23 = vld [vmem:[%s4771_s3 + $0xa8] sm:$0xff]   ;;  %v3748_v24 = vld [vmem:[%s4771_s3 + $0xb0] sm:$0xff]  }
  0x29   : > { %3181 = vmatprep.subr.bf16.mxu1 %v3713_v25  ;;  %v3749_v25 = vld [vmem:[%s4771_s3 + $0xb8] sm:$0xff]  }
  0x2b   : > { %3160 = vmatpush3.bf16.msra.mxu0 %v3714_v26  ;;  %v3807_v26 = vld [vmem:[%s4777_s9 + $0x40] sm:$0xff]  }
  0x2c   : > { %3182 = vmatpush3.bf16.msra.mxu1 %v3715_v27  ;;  %3161 = vmatprep.subr.bf16.mxu0 %v3716_v28  ;;  %v3750_v27 = vld [vmem:[%s4773_s5 + $0x40] sm:$0xff]  }
  0x2d   : > { %3183 = vmatprep.subr.bf16.mxu1 %v3717_v29  ;;  %v3752_v28 = vld [vmem:[%s4773_s5] sm:$0xff]   ;;  %v3751_v29 = vld [vmem:[%s4773_s5 + $0x48] sm:$0xff]  }
  0x2f   : > { %3162 = vmatpush3.bf16.msra.mxu0 %v3718_v30  ;;  %v3754_v30 = vld [vmem:[%s4773_s5 + $0x8] sm:$0xff]  }
  0x30   : > { %3184 = vmatpush3.bf16.msra.mxu1 %v3719_v31  ;;  %3330 = vmatprep.subr.bf16.mxu0 %v3910_v34  ;;  %v3753_v31 = vld [vmem:[%s4773_s5 + $0x50] sm:$0xff]  }
  0x31   : > { %3350 = vmatprep.subr.bf16.mxu1 %v3910_v34 }
  0x32   : > { %764 = vmatmul.mubr.bf16.vlgmr.msra.gmra.mrb[0].mxu0 %v3720_v32  ;;  %v3756_v32 = vld [vmem:[%s4773_s5 + $0x10] sm:$0xff]  }
  0x33   : > { %805 = vmatmul.mubr.bf16.vlgmr.msra.gmra.mrb[0].mxu1 %v3723_v35  ;;  %3331 = vmatpush3.bf16.msra.mxu0 %v3726_v37  ;;  %v3758_v35 = vld [vmem:[%s4773_s5 + $0x18] sm:$0xff]   ;;  %v3760_v37 = vld [vmem:[%s4773_s5 + $0x20] sm:$0xff]  }
  0x34   : > { %3332 = vmatprep.subr.bf16.mxu0 %v3910_v34  ;;  %3351 = vmatpush3.bf16.msra.mxu1 %v3728_v39  ;;  %v3761_v39 = vld [vmem:[%s4773_s5 + $0x70] sm:$0xff]  }
  0x35   : > { %3352 = vmatprep.subr.bf16.mxu1 %v3910_v34  ;;  %3346 = vmatprep.mubr.msk.bf16.mxu0 %vm3911_vm0, %v3910_v34 }
  0x36   : > { %3366 = vmatprep.mubr.msk.bf16.mxu1 %vm3911_vm0, %v3910_v34 }
  0x37   : > { %3333 = vmatpush3.bf16.msra.mxu0 %v3727_v38  ;;  %v3759_v38 = vld [vmem:[%s4773_s5 + $0x68] sm:$0xff]  }
  0x38   : > { %3334 = vmatprep.subr.bf16.mxu0 %v3910_v34  ;;  %3353 = vmatpush3.bf16.msra.mxu1 %v3730_v40  ;;  %v3762_v40 = vld [vmem:[%s4773_s5 + $0x28] sm:$0xff]  }
  0x39   : > { %3354 = vmatprep.subr.bf16.mxu1 %v3910_v34 }
  0x3b   : > { %3335 = vmatpush3.bf16.msra.mxu0 %v3729_v41  ;;  %v3763_v41 = vld [vmem:[%s4773_s5 + $0x78] sm:$0xff]  }
  0x3c   : > { %3336 = vmatprep.subr.bf16.mxu0 %v3910_v34  ;;  %3355 = vmatpush3.bf16.msra.mxu1 %v3732_v43  ;;  %v3765_v43 = vld [vmem:[%s4773_s5 + $0x38] sm:$0xff]  }
  0x3d   : > { %3356 = vmatprep.subr.bf16.mxu1 %v3910_v34 }
  0x3f   : > { %3337 = vmatpush3.bf16.msra.mxu0 %v3731_v42  ;;  %v3764_v42 = vld [vmem:[%s4773_s5 + $0x30] sm:$0xff]  }
  0x40   : > { %3338 = vmatprep.subr.bf16.mxu0 %v3910_v34  ;;  %3357 = vmatpush3.bf16.msra.mxu1 %v3734_v44 }
  0x41   : > { %3358 = vmatprep.subr.bf16.mxu1 %v3910_v34 }
  0x43   : > { %3339 = vmatpush3.bf16.msra.mxu0 %v3733_v45 }
  0x44   : > { %3340 = vmatprep.subr.bf16.mxu0 %v3910_v34  ;;  %3359 = vmatpush3.bf16.msra.mxu1 %v3736_v47 }
  0x45   : > { %3360 = vmatprep.subr.bf16.mxu1 %v3910_v34 }
  0x47   : > { %3341 = vmatpush3.bf16.msra.mxu0 %v3735_v46 }
  0x48   : > { %3342 = vmatprep.subr.bf16.mxu0 %v3910_v34  ;;  %3361 = vmatpush3.bf16.msra.mxu1 %v3738_v49 }
  0x49   : > { %3362 = vmatprep.subr.bf16.mxu1 %v3910_v34 }
  0x4b   : > { %3343 = vmatpush3.bf16.msra.mxu0 %v3737_v48 }
  0x4c   : > { %3344 = vmatprep.subr.bf16.mxu0 %v3910_v34  ;;  %3363 = vmatpush3.bf16.msra.mxu1 %v3740_v51 }
  0x4d   : > { %3364 = vmatprep.subr.bf16.mxu1 %v3910_v34 }
  0x4f   : > { %3345 = vmatpush3.bf16.msra.mxu0 %v3739_v50 }
  0x50   : > { %3370 = vmatprep.subr.bf16.mxu0 %v3910_v34  ;;  %3365 = vmatpush3.bf16.msra.mxu1 %v3741_v52 }
  0x51   : > { %3390 = vmatprep.subr.bf16.mxu1 %v3910_v34 }
 0x105   : > { %v3163_v53 = vpop.f32.mrb[0].mxu0 }
 0x106   : > { %v3185_v54 = vpop.f32.mrb[0].mxu1  ;;  %v3164_v56 = vpop.f32.mrb[1].mxu0 }
 0x107   : > { %v3165_v57 = vadd.f32 %v3164_v56, %v3163_v53  ;;  %v3186_v58 = vpop.f32.mrb[1].mxu1  ;;  %v3166_v59 = vpop.f32.mrb[2].mxu0 }
 0x108   : > { %v3187_v60 = vadd.f32 %v3186_v58, %v3185_v54  ;;  %v3188_v61 = vpop.f32.mrb[2].mxu1  ;;  %v3167_v62 = vpop.f32.mrb[3].mxu0 }
 0x109   : > { %v766_v63 = vadd.f32 %v3165_v57, %v2783_v55  ;;  %v3168_v0 = vadd.f32 %v3167_v62, %v3166_v59  ;;  %v3189_v1 = vpop.f32.mrb[3].mxu1 }
 0x10a   : > { %v3190_v2 = vadd.f32 %v3189_v1, %v3188_v61 }
 0x10b   : > { %v807_v3 = vadd.f32 %v3187_v60, %v766_v63  ;;  %v769_v4 = vadd.f32 %v3168_v0, %v2783_v55  ;;  %v2883_v55 = vld [vmem:[%s4772_s4] ss:$0 sm:$0xff] }
 0x10d   : > { %v813_v5 = vmax.f32 %v807_v3, 0.0  ;;  %v810_v6 = vadd.f32 %v3190_v2, %v769_v4  ;;  %v3766_v2 = vld [vmem:[%s4773_s5 + $0x80] sm:$0xff]  }
 0x10f   : > { %v814_v7 = vmax.f32 %v810_v6, 0.0  ;;  %v818_v8 = vrot.slane %v813_v5, 7  ;;  %v1038_v10 = vrot.slane %v813_v5, 1 }
 0x111   : > { %v819_v11 = vrot.slane %v814_v7, 7  ;;  %v1039_v12 = vrot.slane %v814_v7, 1  ;;  %v841_v13 = vpack.c.bf16 %v814_v7, %v813_v5 }
 0x113   : > { %v1040_v14 = vsel %vm1037_vm2, %v1038_v10, %v1039_v12  ;;  %3347 = vmatmul.mubr.bf16.vlgmr.msra.gmra.mrb[4].mxu0 %v841_v13  ;;  %v820_v15 = vsel %vm817_vm1, %v818_v8, %v819_v11  ;;  %v3767_v11 = vld [vmem:[%s4773_s5 + $0x88] sm:$0xff]   ;;  %v3769_v13 = vld [vmem:[%s4773_s5 + $0x98] sm:$0xff]  }
 0x114   : > { %v2881_v17 = vpack.c.bf16 %v1039_v12, %v1040_v14  ;;  %3371 = vmatpush3.bf16.msra.mxu0 %v3742_v9  ;;  %v2854_v18 = vpack.c.bf16 %v820_v15, %v818_v8  ;;  %3386 = vmatprep.mubr.msk.bf16.mxu0 %vm3911_vm0, %v3910_v34  ;;  %v3768_v12 = vld [vmem:[%s4773_s5 + $0x90] sm:$0xff]   ;;  %v3770_v14 = vld [vmem:[%s4773_s5 + $0xa0] sm:$0xff]   ;;  %v3771_v15 = vld [vmem:[%s4773_s5 + $0xa8] sm:$0xff]  }
 0x115   : > { %3372 = vmatprep.subr.bf16.mxu0 %v3910_v34 }
 0x116   : > { %3367 = vmatmul.mubr.msk.bf16.vlgmr.msra.gmra.mrb[4].mxu1 %vm4212_vm5, %v2854_v18  ;;  %v3773_v18 = vld [vmem:[%s4773_s5 + $0xb8] sm:$0xff]  }
 0x117   : > { %3406 = vmatprep.mubr.msk.bf16.mxu1 %vm3911_vm0, %v3910_v34  ;;  %3391 = vmatpush3.bf16.msra.mxu1 %v3750_v27  ;;  %v3781_v27 = vld [vmem:[%s4775_s7 + $0x18] sm:$0xff]  }
 0x118   : > { %3373 = vmatpush3.bf16.msra.mxu0 %v3743_v19  ;;  %3392 = vmatprep.subr.bf16.mxu1 %v3910_v34  ;;  %v3774_v19 = vld [vmem:[%s4775_s7 + $0x40] sm:$0xff]  }
 0x119   : > { %3374 = vmatprep.subr.bf16.mxu0 %v3910_v34 }
 0x11b   : > { %3393 = vmatpush3.bf16.msra.mxu1 %v3751_v29  ;;  %v3783_v29 = vld [vmem:[%s4775_s7 + $0x20] sm:$0xff]  }
 0x11c   : > { %3375 = vmatpush3.bf16.msra.mxu0 %v3744_v20  ;;  %3394 = vmatprep.subr.bf16.mxu1 %v3910_v34  ;;  %v3775_v20 = vld [vmem:[%s4775_s7] sm:$0xff]  }
 0x11d   : > { %3376 = vmatprep.subr.bf16.mxu0 %v3910_v34 }
 0x11f   : > { %3395 = vmatpush3.bf16.msra.mxu1 %v3753_v31  ;;  %v3785_v31 = vld [vmem:[%s4775_s7 + $0x28] sm:$0xff]  }
 0x120   : > { %3377 = vmatpush3.bf16.msra.mxu0 %v3745_v21  ;;  %3396 = vmatprep.subr.bf16.mxu1 %v3910_v34  ;;  %v3776_v21 = vld [vmem:[%s4775_s7 + $0x48] sm:$0xff]  }
 0x121   : > { %3378 = vmatprep.subr.bf16.mxu0 %v3910_v34 }
 0x123   : > { %3397 = vmatpush3.bf16.msra.mxu1 %v3755_v33  ;;  %v3787_v33 = vld [vmem:[%s4775_s7 + $0x30] sm:$0xff]  }
 0x124   : > { %3379 = vmatpush3.bf16.msra.mxu0 %v3746_v22  ;;  %3398 = vmatprep.subr.bf16.mxu1 %v3910_v34  ;;  %v3777_v22 = vld [vmem:[%s4775_s7 + $0x8] sm:$0xff]  }
 0x125   : > { %3380 = vmatprep.subr.bf16.mxu0 %v3910_v34 }
 0x127   : > { %3399 = vmatpush3.bf16.msra.mxu1 %v3757_v36  ;;  %v3789_v36 = vld [vmem:[%s4775_s7 + $0x38] sm:$0xff]  }
 0x128   : > { %3381 = vmatpush3.bf16.msra.mxu0 %v3747_v23  ;;  %3400 = vmatprep.subr.bf16.mxu1 %v3910_v34  ;;  %v3778_v23 = vld [vmem:[%s4775_s7 + $0x50] sm:$0xff]  }
 0x129   : > { %3382 = vmatprep.subr.bf16.mxu0 %v3910_v34 }
 0x12b   : > { %3401 = vmatpush3.bf16.msra.mxu1 %v3759_v38 }
 0x12c   : > { %3383 = vmatpush3.bf16.msra.mxu0 %v3748_v24  ;;  %3402 = vmatprep.subr.bf16.mxu1 %v3910_v34  ;;  %v3779_v24 = vld [vmem:[%s4775_s7 + $0x10] sm:$0xff]  }
 0x12d   : > { %3384 = vmatprep.subr.bf16.mxu0 %v3910_v34 }
 0x12f   : > { %3403 = vmatpush3.bf16.msra.mxu1 %v3761_v39 }
 0x130   : > { %3385 = vmatpush3.bf16.msra.mxu0 %v3749_v25  ;;  %3404 = vmatprep.subr.bf16.mxu1 %v3910_v34  ;;  %v3780_v25 = vld [vmem:[%s4775_s7 + $0x58] sm:$0xff]  }
 0x131   : > { %3410 = vmatprep.subr.bf16.mxu0 %v3910_v34 }
 0x133   : > { %3387 = vmatmul.mubr.msk.bf16.vlgmr.msra.gmra.mrb[8].mxu0 %vm4252_vm6, %v2881_v17  ;;  %3405 = vmatpush3.bf16.msra.mxu1 %v3763_v41  ;;  %v3772_v17 = vld [vmem:[%s4773_s5 + $0xb0] sm:$0xff]  }
 0x134   : > { %3426 = vmatprep.mubr.msk.bf16.mxu0 %vm3911_vm0, %v3910_v34  ;;  %3411 = vmatpush3.bf16.msra.mxu0 %v3752_v28  ;;  %v3782_v28 = vld [vmem:[%s4775_s7 + $0x60] sm:$0xff]  }
 0x135   : > { %3412 = vmatprep.subr.bf16.mxu0 %v3910_v34  ;;  %3430 = vmatprep.subr.bf16.mxu1 %v3910_v34 }
 0x138   : > { %3413 = vmatpush3.bf16.msra.mxu0 %v3754_v30  ;;  %v3784_v30 = vld [vmem:[%s4775_s7 + $0x68] sm:$0xff]  }
 0x139   : > { %3414 = vmatprep.subr.bf16.mxu0 %v3910_v34 }
 0x13c   : > { %3415 = vmatpush3.bf16.msra.mxu0 %v3756_v32  ;;  %v3786_v32 = vld [vmem:[%s4775_s7 + $0x70] sm:$0xff]  }
 0x13d   : > { %3416 = vmatprep.subr.bf16.mxu0 %v3910_v34 }
 0x140   : > { %3417 = vmatpush3.bf16.msra.mxu0 %v3758_v35  ;;  %v3788_v35 = vld [vmem:[%s4775_s7 + $0x78] sm:$0xff]  }
 0x141   : > { %3418 = vmatprep.subr.bf16.mxu0 %v3910_v34 }
 0x144   : > { %3419 = vmatpush3.bf16.msra.mxu0 %v3760_v37 }
 0x145   : > { %3420 = vmatprep.subr.bf16.mxu0 %v3910_v34 }
 0x148   : > { %3421 = vmatpush3.bf16.msra.mxu0 %v3762_v40 }
 0x149   : > { %3422 = vmatprep.subr.bf16.mxu0 %v3910_v34 }
 0x14c   : > { %3423 = vmatpush3.bf16.msra.mxu0 %v3764_v42 }
 0x14d   : > { %3424 = vmatprep.subr.bf16.mxu0 %v3910_v34 }
 0x150   : > { %3425 = vmatpush3.bf16.msra.mxu0 %v3765_v43 }
 0x151   : > { %3450 = vmatprep.subr.bf16.mxu0 %v3910_v34 }
 0x1e6   : > { %v941_v44 = vpop.f32.mrb[4].mxu0 }
 0x1e7   : > { %v3348_v45 = vpop.f32.mrb[5].mxu0 }
 0x1e8   : > { %v944_v46 = vpop.f32.mrb[6].mxu0 }
 0x1e9   : > { %v3349_v47 = vpop.f32.mrb[7].mxu0  ;;  %v1030_v48 = vpop.f32.mrb[4].mxu1 }
 0x1ea   : > { %v1031_v49 = vadd.f32 %v1030_v48, %v941_v44  ;;  %v3368_v50 = vpop.f32.mrb[5].mxu1  ;;  %v2947_v48 = vld [vmem:[%s4774_s6] ss:$0 sm:$0xff] }
 0x1eb   : > { %v1033_v51 = vpop.f32.mrb[6].mxu1 }
 0x1ec   : > { %v1034_v52 = vadd.f32 %v1033_v51, %v944_v46  ;;  %v3369_v53 = vpop.f32.mrb[7].mxu1 }
 0x206   : > { %v1144_v54 = vpop.f32.mrb[8].mxu0 }
 0x207   : > { %v1151_v56 = vadd.f32 %v1144_v54, %v1031_v49  ;;  %v3388_v57 = vpop.f32.mrb[9].mxu0 }
 0x208   : > { %v1147_v58 = vpop.f32.mrb[10].mxu0 }
 0x209   : > { %v1160_v59 = vadd.f32 %v2883_v55, %v1151_v56  ;;  %v1152_v60 = vadd.f32 %v1147_v58, %v1034_v52  ;;  %v3389_v61 = vpop.f32.mrb[11].mxu0 }
 0x20a   : > { %v3790_v61 = vld [vmem:[%s4775_s7 + $0x80] sm:$0xff]  }
 0x20b   : > { %v1162_v62 = vmax.f32 %v1160_v59, 0.0  ;;  %v1161_v63 = vadd.f32 %v2883_v55, %v1152_v60 }
 0x20d   : > { %v1163_v0 = vmax.f32 %v1161_v63, 0.0  ;;  %v1166_v1 = vrot.slane %v1162_v62, 7  ;;  %v1385_v3 = vrot.slane %v1162_v62, 1 }
 0x20f   : > { %v1167_v4 = vrot.slane %v1163_v0, 7  ;;  %v1386_v5 = vrot.slane %v1163_v0, 1  ;;  %v1189_v6 = vpack.c.bf16 %v1163_v0, %v1162_v62 }
 0x211   : > { %v1168_v7 = vsel %vm817_vm1, %v1166_v1, %v1167_v4  ;;  %v1387_v8 = vsel %vm1037_vm2, %v1385_v3, %v1386_v5  ;;  %3407 = vmatmul.mubr.bf16.vlgmr.msra.gmra.mrb[8].mxu1 %v1189_v6  ;;  %v3791_v3 = vld [vmem:[%s4775_s7 + $0xc0] sm:$0xff]  }
 0x212   : > { %v2945_v9 = vpack.c.bf16 %v1386_v5, %v1387_v8  ;;  %3431 = vmatpush3.bf16.msra.mxu1 %v3766_v2  ;;  %v2918_v10 = vpack.c.bf16 %v1168_v7, %v1166_v1  ;;  %3446 = vmatprep.mubr.msk.bf16.mxu1 %vm3911_vm0, %v3910_v34  ;;  %v3792_v7 = vld [vmem:[%s4775_s7 + $0x88] sm:$0xff]  }
 0x213   : > { %3432 = vmatprep.subr.bf16.mxu1 %v3910_v34 }
 0x214   : > { %3427 = vmatmul.mubr.msk.bf16.vlgmr.msra.gmra.mrb[12].mxu0 %vm4212_vm5, %v2918_v10  ;;  %v3793_v10 = vld [vmem:[%s4775_s7 + $0xc8] sm:$0xff]  }
 0x215   : > { %3466 = vmatprep.mubr.msk.bf16.mxu0 %vm3911_vm0, %v3910_v34  ;;  %3451 = vmatpush3.bf16.msra.mxu0 %v3774_v19  ;;  %v3802_v19 = vld [vmem:[%s4775_s7 + $0xb0] sm:$0xff]  }
 0x216   : > { %3433 = vmatpush3.bf16.msra.mxu1 %v3767_v11  ;;  %3452 = vmatprep.subr.bf16.mxu0 %v3910_v34  ;;  %v3794_v11 = vld [vmem:[%s4775_s7 + $0x90] sm:$0xff]  }
 0x217   : > { %3434 = vmatprep.subr.bf16.mxu1 %v3910_v34 }
 0x219   : > { %3453 = vmatpush3.bf16.msra.mxu0 %v3776_v21  ;;  %v3804_v21 = vld [vmem:[%s4775_s7 + $0xb8] sm:$0xff]  }
 0x21a   : > { %3435 = vmatpush3.bf16.msra.mxu1 %v3768_v12  ;;  %3454 = vmatprep.subr.bf16.mxu0 %v3910_v34  ;;  %v3796_v12 = vld [vmem:[%s4775_s7 + $0x98] sm:$0xff]  }
 0x21b   : > { %3436 = vmatprep.subr.bf16.mxu1 %v3910_v34 }
 0x21d   : > { %3455 = vmatpush3.bf16.msra.mxu0 %v3778_v23  ;;  %v3806_v23 = vld [vmem:[%s4777_s9 + $0x20] sm:$0xff]  }
 0x21e   : > { %3437 = vmatpush3.bf16.msra.mxu1 %v3769_v13  ;;  %3456 = vmatprep.subr.bf16.mxu0 %v3910_v34  ;;  %v3797_v13 = vld [vmem:[%s4775_s7 + $0xd8] sm:$0xff]  }
 0x21f   : > { %3438 = vmatprep.subr.bf16.mxu1 %v3910_v34 }
 0x221   : > { %3457 = vmatpush3.bf16.msra.mxu0 %v3780_v25  ;;  %v3809_v25 = vld [vmem:[%s4777_s9 + $0x48] sm:$0xff]  }
 0x222   : > { %3439 = vmatpush3.bf16.msra.mxu1 %v3770_v14  ;;  %3458 = vmatprep.subr.bf16.mxu0 %v3910_v34  ;;  %v3798_v14 = vld [vmem:[%s4775_s7 + $0xa0] sm:$0xff]  }
 0x223   : > { %3440 = vmatprep.subr.bf16.mxu1 %v3910_v34 }
 0x225   : > { %3459 = vmatpush3.bf16.msra.mxu0 %v3782_v28  ;;  %v3811_v28 = vld [vmem:[%s4777_s9 + $0x50] sm:$0xff]  }
 0x226   : > { %3441 = vmatpush3.bf16.msra.mxu1 %v3771_v15  ;;  %3460 = vmatprep.subr.bf16.mxu0 %v3910_v34  ;;  %v3799_v15 = vld [vmem:[%s4775_s7 + $0xe0] sm:$0xff]  }
 0x227   : > { %3442 = vmatprep.subr.bf16.mxu1 %v3910_v34 }
 0x229   : > { %3461 = vmatpush3.bf16.msra.mxu0 %v3784_v30  ;;  %v3813_v30 = vld [vmem:[%s4777_s9 + $0x58] sm:$0xff]  }
 0x22a   : > { %3443 = vmatpush3.bf16.msra.mxu1 %v3772_v17  ;;  %3462 = vmatprep.subr.bf16.mxu0 %v3910_v34  ;;  %v3800_v17 = vld [vmem:[%s4775_s7 + $0xa8] sm:$0xff]  }
 0x22b   : > { %3444 = vmatprep.subr.bf16.mxu1 %v3910_v34 }
 0x22d   : > { %3463 = vmatpush3.bf16.msra.mxu0 %v3786_v32 }
 0x22e   : > { %3445 = vmatpush3.bf16.msra.mxu1 %v3773_v18  ;;  %3464 = vmatprep.subr.bf16.mxu0 %v3910_v34  ;;  %v3801_v18 = vld [vmem:[%s4775_s7 + $0xe8] sm:$0xff]  }
 0x22f   : > { %3470 = vmatprep.subr.bf16.mxu1 %v3910_v34 }
 0x231   : > { %3447 = vmatmul.mubr.msk.bf16.vlgmr.msra.gmra.mrb[12].mxu1 %vm4252_vm6, %v2945_v9  ;;  %3465 = vmatpush3.bf16.msra.mxu0 %v3788_v35 }
 0x232   : > { %3486 = vmatprep.mubr.msk.bf16.mxu1 %vm3911_vm0, %v3910_v34  ;;  %3471 = vmatpush3.bf16.msra.mxu1 %v3775_v20  ;;  %v3803_v20 = vld [vmem:[%s4775_s7 + $0xf0] sm:$0xff]  }
 0x233   : > { %3472 = vmatprep.subr.bf16.mxu1 %v3910_v34  ;;  %3490 = vmatprep.subr.bf16.mxu0 %v3910_v34 }
 0x236   : > { %3473 = vmatpush3.bf16.msra.mxu1 %v3777_v22  ;;  %v3805_v22 = vld [vmem:[%s4775_s7 + $0xf8] sm:$0xff]  }
 0x237   : > { %3474 = vmatprep.subr.bf16.mxu1 %v3910_v34 }
 0x23a   : > { %3475 = vmatpush3.bf16.msra.mxu1 %v3779_v24  ;;  %v3808_v24 = vld [vmem:[%s4777_s9 + $0x28] sm:$0xff]  }
 0x23b   : > { %3476 = vmatprep.subr.bf16.mxu1 %v3910_v34 }
 0x23e   : > { %3477 = vmatpush3.bf16.msra.mxu1 %v3781_v27  ;;  %v3810_v27 = vld [vmem:[%s4777_s9 + $0x30] sm:$0xff]  }
 0x23f   : > { %3478 = vmatprep.subr.bf16.mxu1 %v3910_v34 }
 0x242   : > { %3479 = vmatpush3.bf16.msra.mxu1 %v3783_v29  ;;  %v3812_v29 = vld [vmem:[%s4777_s9 + $0x38] sm:$0xff]  }
 0x243   : > { %3480 = vmatprep.subr.bf16.mxu1 %v3910_v34 }
 0x246   : > { %3481 = vmatpush3.bf16.msra.mxu1 %v3785_v31 }
 0x247   : > { %3482 = vmatprep.subr.bf16.mxu1 %v3910_v34 }
 0x24a   : > { %3483 = vmatpush3.bf16.msra.mxu1 %v3787_v33 }
 0x24b   : > { %3484 = vmatprep.subr.bf16.mxu1 %v3910_v34 }
 0x24e   : > { %3485 = vmatpush3.bf16.msra.mxu1 %v3789_v36 }
 0x24f   : > { %3510 = vmatprep.subr.bf16.mxu1 %v3910_v34 }
 0x2e4   : > { %v1289_v37 = vpop.f32.mrb[8].mxu1 }
 0x2e5   : > { %v3408_v38 = vpop.f32.mrb[9].mxu1 }
 0x2e6   : > { %v1292_v39 = vpop.f32.mrb[10].mxu1 }
 0x2e7   : > { %v3409_v40 = vpop.f32.mrb[11].mxu1  ;;  %v1378_v41 = vpop.f32.mrb[12].mxu0 }
 0x2e8   : > { %v1379_v42 = vadd.f32 %v1378_v41, %v1289_v37  ;;  %v3428_v43 = vpop.f32.mrb[13].mxu0 }
 0x2e9   : > { %v1381_v44 = vpop.f32.mrb[14].mxu0 }
 0x2ea   : > { %v1382_v45 = vadd.f32 %v1381_v44, %v1292_v39  ;;  %v3429_v46 = vpop.f32.mrb[15].mxu0 }
 0x304   : > { %v1491_v47 = vpop.f32.mrb[12].mxu1 }
 0x305   : > { %v1498_v49 = vadd.f32 %v1491_v47, %v1379_v42  ;;  %v3448_v50 = vpop.f32.mrb[13].mxu1 }
 0x306   : > { %v1494_v51 = vpop.f32.mrb[14].mxu1 }
 0x307   : > { %v1507_v52 = vadd.f32 %v2947_v48, %v1498_v49  ;;  %v1499_v53 = vadd.f32 %v1494_v51, %v1382_v45  ;;  %v3449_v54 = vpop.f32.mrb[15].mxu1  ;;  %v3038_v49 = vld [vmem:[%s4776_s8] ss:$0 sm:$0xff] }
 0x309   : > { %v1509_v55 = vmax.f32 %v1507_v52, 0.0  ;;  %v1508_v56 = vadd.f32 %v2947_v48, %v1499_v53 }
 0x30b   : > { %v1510_v57 = vmax.f32 %v1508_v56, 0.0  ;;  %v1513_v58 = vrot.slane %v1509_v55, 7  ;;  %v1732_v59 = vrot.slane %v1509_v55, 1  ;;  %v1848_v60 = vrot.slane %v1509_v55, 2 }
 0x30d   : > { %v1514_v62 = vrot.slane %v1510_v57, 7  ;;  %v1733_v63 = vrot.slane %v1510_v57, 1  ;;  %v1849_v0 = vrot.slane %v1510_v57, 2  ;;  %v1536_v1 = vpack.c.bf16 %v1510_v57, %v1509_v55 }
 0x30f   : > { %3467 = vmatmul.mubr.bf16.vlgmr.msra.gmra.mrb[16].mxu0 %v1536_v1  ;;  %v1515_v2 = vsel %vm817_vm1, %v1513_v58, %v1514_v62  ;;  %v1734_v4 = vsel %vm1037_vm2, %v1732_v59, %v1733_v63  ;;  %v1850_v5 = vsel %vm1847_vm7, %v1848_v60, %v1849_v0  ;;  %v3815_v59 = vld [vmem:[%s4777_s9 + $0x80] sm:$0xff]   ;;  %v3816_v62 = vld [vmem:[%s4777_s9 + $0x8] sm:$0xff]   ;;  %v3819_v1 = vld [vmem:[%s4777_s9 + $0x90] sm:$0xff]  }
 0x310   : > { %3491 = vmatpush3.bf16.msra.mxu0 %v3790_v61  ;;  %v2982_v6 = vpack.c.bf16 %v1515_v2, %v1513_v58  ;;  %3506 = vmatprep.mubr.msk.bf16.mxu0 %vm3911_vm0, %v3910_v34  ;;  %v3009_v8 = vpack.c.bf16 %v1733_v63, %v1734_v4  ;;  %v3036_v9 = vpack.c.bf16 %v1849_v0, %v1850_v5  ;;  %v3814_v58 = vld [vmem:[%s4777_s9] sm:$0xff]   ;;  %v3817_v63 = vld [vmem:[%s4777_s9 + $0x88] sm:$0xff]   ;;  %v3818_v0 = vld [vmem:[%s4777_s9 + $0x10] sm:$0xff]  }
 0x311   : > { %3492 = vmatprep.subr.bf16.mxu0 %v3910_v34  ;;  %v3821_v4 = vld [vmem:[%s4777_s9 + $0x98] sm:$0xff]  }
 0x312   : > { %3487 = vmatmul.mubr.msk.bf16.vlgmr.msra.gmra.mrb[16].mxu1 %vm4212_vm5, %v2982_v6  ;;  %v3822_v6 = vld [vmem:[%s4777_s9 + $0x60] sm:$0xff]  }
 0x313   : > { %3511 = vmatpush3.bf16.msra.mxu1 %v3791_v3  ;;  %3526 = vmatprep.mubr.msk.bf16.mxu1 %vm3911_vm0, %v3910_v34  ;;  %v3820_v3 = vld [vmem:[%s4777_s9 + $0x18] sm:$0xff]  }
 0x314   : > { %3493 = vmatpush3.bf16.msra.mxu0 %v3792_v7  ;;  %3512 = vmatprep.subr.bf16.mxu1 %v3910_v34  ;;  %v3823_v7 = vld [vmem:[%s4777_s9 + $0xc0] sm:$0xff]  }
 0x315   : > { %3494 = vmatprep.subr.bf16.mxu0 %v3910_v34 }
 0x317   : > { %3513 = vmatpush3.bf16.msra.mxu1 %v3793_v10  ;;  %v3825_v10 = vld [vmem:[%s4777_s9 + $0xc8] sm:$0xff]  }
 0x318   : > { %3495 = vmatpush3.bf16.msra.mxu0 %v3794_v11  ;;  %3514 = vmatprep.subr.bf16.mxu1 %v3910_v34  ;;  %v3826_v11 = vld [vmem:[%s4777_s9 + $0x70] sm:$0xff]  }
 0x319   : > { %3496 = vmatprep.subr.bf16.mxu0 %v3910_v34 }
 0x31b   : > { %3515 = vmatpush3.bf16.msra.mxu1 %v3795_v16  ;;  %v3827_v16 = vld [vmem:[%s4777_s9 + $0xd0] sm:$0xff]  }
 0x31c   : > { %3497 = vmatpush3.bf16.msra.mxu0 %v3796_v12  ;;  %3516 = vmatprep.subr.bf16.mxu1 %v3910_v34  ;;  %v3828_v12 = vld [vmem:[%s4777_s9 + $0x78] sm:$0xff]  }
 0x31d   : > { %3498 = vmatprep.subr.bf16.mxu0 %v3910_v34 }
 0x31f   : > { %3517 = vmatpush3.bf16.msra.mxu1 %v3797_v13  ;;  %v3829_v13 = vld [vmem:[%s4777_s9 + $0xd8] sm:$0xff]  }
 0x320   : > { %3499 = vmatpush3.bf16.msra.mxu0 %v3798_v14  ;;  %3518 = vmatprep.subr.bf16.mxu1 %v3910_v34  ;;  %v3830_v14 = vld [vmem:[%s4777_s9 + $0xa0] sm:$0xff]  }
 0x321   : > { %3500 = vmatprep.subr.bf16.mxu0 %v3910_v34 }
 0x323   : > { %3519 = vmatpush3.bf16.msra.mxu1 %v3799_v15 }
 0x324   : > { %3501 = vmatpush3.bf16.msra.mxu0 %v3800_v17  ;;  %3520 = vmatprep.subr.bf16.mxu1 %v3910_v34 }
 0x325   : > { %3502 = vmatprep.subr.bf16.mxu0 %v3910_v34 }
 0x327   : > { %3521 = vmatpush3.bf16.msra.mxu1 %v3801_v18  ;;  %v3831_v18 = vld [vmem:[%s4777_s9 + $0xa8] sm:$0xff]  }
 0x328   : > { %3503 = vmatpush3.bf16.msra.mxu0 %v3802_v19  ;;  %3522 = vmatprep.subr.bf16.mxu1 %v3910_v34  ;;  %v3832_v19 = vld [vmem:[%s4777_s9 + $0xb0] sm:$0xff]  }
 0x329   : > { %3504 = vmatprep.subr.bf16.mxu0 %v3910_v34 }
 0x32b   : > { %3523 = vmatpush3.bf16.msra.mxu1 %v3803_v20  ;;  %v3833_v20 = vld [vmem:[%s4777_s9 + $0xb8] sm:$0xff]  }
 0x32c   : > { %3505 = vmatpush3.bf16.msra.mxu0 %v3804_v21  ;;  %3524 = vmatprep.subr.bf16.mxu1 %v3910_v34  ;;  %v3834_v21 = vld [vmem:[%s4777_s9 + $0xe0] sm:$0xff]  }
 0x32d   : > { %3554 = vmatprep.subr.bf16.mxu0 %v3910_v34 }
 0x32f   : > { %3507 = vmatmul.mubr.msk.bf16.vlgmr.msra.gmra.mrb[20].mxu0 %vm4252_vm6, %v3009_v8  ;;  %3525 = vmatpush3.bf16.msra.mxu1 %v3805_v22 }
 0x330   : > { %3530 = vmatprep.subr.bf16.mxu1 %v3910_v34  ;;  %3562 = vmatprep.mubr.msk.bf16.mxu0 %vm3911_vm0, %v3910_v34 }
 0x331   : > { %3555 = vmatpush3.bf16.msra.mxu0 %v3807_v26  ;;  %v3836_v26 = vld [vmem:[%s4777_s9 + $0xf0] sm:$0xff]  }
 0x332   : > { %3527 = vmatmul.mubr.msk.bf16.vlgmr.msra.gmra.mrb[20].mxu1 %vm3035_vm8, %v3036_v9  ;;  %3556 = vmatprep.subr.bf16.mxu0 %v3910_v34  ;;  %v3824_v9 = vld [vmem:[%s4777_s9 + $0x68] sm:$0xff]  }
 0x333   : > { %3538 = vmatprep.mubr.msk.bf16.mxu1 %vm3911_vm0, %v3910_v34  ;;  %3531 = vmatpush3.bf16.msra.mxu1 %v3806_v23  ;;  %v3835_v23 = vld [vmem:[%s4777_s9 + $0xe8] sm:$0xff]  }
 0x334   : > { %3532 = vmatprep.subr.bf16.mxu1 %v3910_v34 }
 0x335   : > { %3557 = vmatpush3.bf16.msra.mxu0 %v3809_v25 }
 0x336   : > { %3558 = vmatprep.subr.bf16.mxu0 %v3910_v34 }
 0x337   : > { %3533 = vmatpush3.bf16.msra.mxu1 %v3808_v24  ;;  %v3837_v24 = vld [vmem:[%s4777_s9 + $0xf8] sm:$0xff]  }
 0x338   : > { %3534 = vmatprep.subr.bf16.mxu1 %v3910_v34 }
 0x339   : > { %3559 = vmatpush3.bf16.msra.mxu0 %v3811_v28  ;;  %v3839_v28 = vld [vmem:[%s4779_s11 + $0x8] sm:$0xff]  }
 0x33a   : > { %3560 = vmatprep.subr.bf16.mxu0 %v3910_v34 }
 0x33b   : > { %3535 = vmatpush3.bf16.msra.mxu1 %v3810_v27  ;;  %v3838_v27 = vld [vmem:[%s4779_s11] sm:$0xff]  }
 0x33c   : > { %3536 = vmatprep.subr.bf16.mxu1 %v3910_v34 }
 0x33d   : > { %3561 = vmatpush3.bf16.msra.mxu0 %v3813_v30  ;;  %v3841_v30 = vld [vmem:[%s4779_s11 + $0x18] sm:$0xff]  }
 0x33e   : > { %3578 = vmatprep.subr.bf16.mxu0 %v3910_v34 }
 0x33f   : > { %3537 = vmatpush3.bf16.msra.mxu1 %v3812_v29  ;;  %v3840_v29 = vld [vmem:[%s4779_s11 + $0x10] sm:$0xff]  }
 0x340   : > { %3542 = vmatprep.subr.bf16.mxu1 %v3910_v34 }
 0x3e2   : > { %v1636_v31 = vpop.f32.mrb[16].mxu0 }
 0x3e3   : > { %v3468_v32 = vpop.f32.mrb[17].mxu0 }
 0x3e4   : > { %v1639_v33 = vpop.f32.mrb[18].mxu0  ;;  %v3843_v32 = vld [vmem:[%s4779_s11 + $0x28] sm:$0xff]  }
 0x3e5   : > { %v3469_v35 = vpop.f32.mrb[19].mxu0  ;;  %v1725_v36 = vpop.f32.mrb[16].mxu1 }
 0x3e6   : > { %v1726_v37 = vadd.f32 %v1725_v36, %v1636_v31  ;;  %v3488_v38 = vpop.f32.mrb[17].mxu1  ;;  %v3842_v31 = vld [vmem:[%s4779_s11 + $0x20] sm:$0xff]   ;;  %v3845_v35 = vld [vmem:[%s4779_s11 + $0x38] sm:$0xff]  }
 0x3e7   : > { %v1728_v39 = vpop.f32.mrb[18].mxu1 }
 0x3e8   : > { %v1729_v40 = vadd.f32 %v1728_v39, %v1639_v33  ;;  %v3489_v41 = vpop.f32.mrb[19].mxu1  ;;  %v3844_v33 = vld [vmem:[%s4779_s11 + $0x30] sm:$0xff]  }
 0x402   : > { %v1838_v42 = vpop.f32.mrb[20].mxu0 }
 0x403   : > { %v1845_v43 = vadd.f32 %v1838_v42, %v1726_v37  ;;  %v3508_v44 = vpop.f32.mrb[21].mxu0 }
 0x404   : > { %v1841_v45 = vpop.f32.mrb[22].mxu0 }
 0x405   : > { %v1846_v46 = vadd.f32 %v1841_v45, %v1729_v40  ;;  %v3509_v47 = vpop.f32.mrb[23].mxu0  ;;  %v1954_v48 = vpop.f32.mrb[20].mxu1 }
 0x406   : > { %v1961_v50 = vadd.f32 %v1954_v48, %v1845_v43  ;;  %v3528_v51 = vpop.f32.mrb[21].mxu1 }
 0x407   : > { %v1957_v52 = vpop.f32.mrb[22].mxu1 }
 0x408   : > { %v1970_v53 = vadd.f32 %v3038_v49, %v1961_v50  ;;  %v1962_v54 = vadd.f32 %v1957_v52, %v1846_v46  ;;  %v3529_v55 = vpop.f32.mrb[23].mxu1 }
 0x40a   : > { %v1972_v56 = vmax.f32 %v1970_v53, 0.0  ;;  %v1971_v2 = vadd.f32 %v3038_v49, %v1962_v54 }
 0x40c   : > { %v4555_v57 = vpack.c.bf16 %v1972_v56, %v1972_v56  ;;  %v1973_v5 = vmax.f32 %v1971_v2, 0.0 }
 0x40e   : > { %v1993_v60 = vrot.slane %v4555_v57, 1  ;;  %v2138_v61 = vrot.slane %v4555_v57, 2  ;;  %v4601_v8 = vpack.c.bf16 %v1973_v5, %v1973_v5  ;;  %v2216_v15 = vrot.slane %v4555_v57, 3 }
 0x410   : > { %3539 = vmatmul.mubr.msk.bf16.vlgmr.msra.gmra.mrb[24].mxu1 %vm2018_vm9, %v1993_v60  ;;  %3563 = vmatmul.mubr.msk.bf16.vlgmr.msra.gmra.mrb[24].mxu0 %vm2018_vm9, %v2138_v61  ;;  %v2451_v17 = vrot.slane %v4601_v8, 2  ;;  %v2373_v22 = vrot.slane %v4601_v8, 1  ;;  %v2529_v25 = vrot.slane %v4601_v8, 3 }
 0x411   : > { %3543 = vmatpush3.bf16.msra.mxu1 %v3814_v58  ;;  %3579 = vmatpush3.bf16.msra.mxu0 %v3815_v59 }
 0x412   : > { %3544 = vmatprep.subr.bf16.mxu1 %v3910_v34  ;;  %3580 = vmatprep.subr.bf16.mxu0 %v3910_v34 }
 0x413   : > { %3550 = vmatprep.mubr.msk.bf16.mxu1 %vm3911_vm0, %v3910_v34  ;;  %3586 = vmatprep.mubr.msk.bf16.mxu0 %vm3911_vm0, %v3910_v34 }
 0x415   : > { %3545 = vmatpush3.bf16.msra.mxu1 %v3816_v62  ;;  %3581 = vmatpush3.bf16.msra.mxu0 %v3817_v63 }
 0x416   : > { %3546 = vmatprep.subr.bf16.mxu1 %v3910_v34  ;;  %3582 = vmatprep.subr.bf16.mxu0 %v3910_v34 }
 0x419   : > { %3547 = vmatpush3.bf16.msra.mxu1 %v3818_v0  ;;  %3583 = vmatpush3.bf16.msra.mxu0 %v3819_v1 }
 0x41a   : > { %3548 = vmatprep.subr.bf16.mxu1 %v3910_v34  ;;  %3584 = vmatprep.subr.bf16.mxu0 %v3910_v34 }
 0x41d   : > { %3549 = vmatpush3.bf16.msra.mxu1 %v3820_v3  ;;  %3585 = vmatpush3.bf16.msra.mxu0 %v3821_v4 }
 0x41e   : > { %3566 = vmatprep.subr.bf16.mxu1 %v3910_v34  ;;  %3602 = vmatprep.subr.bf16.mxu0 %v3910_v34 }
 0x420   : > { %3551 = vmatmul.mubr.msk.bf16.vlgmr.msra.gmra.mrb[28].mxu1 %vm2018_vm9, %v4555_v57  ;;  %3587 = vmatmul.mubr.msk.bf16.vlgmr.msra.gmra.mrb[28].mxu0 %vm2018_vm9, %v4601_v8 }
 0x421   : > { %3567 = vmatpush3.bf16.msra.mxu1 %v3822_v6  ;;  %3603 = vmatpush3.bf16.msra.mxu0 %v3823_v7  ;;  %v2598_v6 = vld [vmem:[%s4778_s10] sm:$0x1] }
 0x422   : > { %3568 = vmatprep.subr.bf16.mxu1 %v3910_v34  ;;  %3604 = vmatprep.subr.bf16.mxu0 %v3910_v34 }
 0x423   : > { %3574 = vmatprep.mubr.msk.bf16.mxu1 %vm3911_vm0, %v3910_v34  ;;  %3610 = vmatprep.mubr.msk.bf16.mxu0 %vm3911_vm0, %v3910_v34 }
 0x425   : > { %3569 = vmatpush3.bf16.msra.mxu1 %v3824_v9  ;;  %3605 = vmatpush3.bf16.msra.mxu0 %v3825_v10 }
 0x426   : > { %3570 = vmatprep.subr.bf16.mxu1 %v3910_v34  ;;  %3606 = vmatprep.subr.bf16.mxu0 %v3910_v34 }
 0x429   : > { %3571 = vmatpush3.bf16.msra.mxu1 %v3826_v11  ;;  %3607 = vmatpush3.bf16.msra.mxu0 %v3827_v16 }
 0x42a   : > { %3572 = vmatprep.subr.bf16.mxu1 %v3910_v34  ;;  %3608 = vmatprep.subr.bf16.mxu0 %v3910_v34 }
 0x42d   : > { %3573 = vmatpush3.bf16.msra.mxu1 %v3828_v12  ;;  %3609 = vmatpush3.bf16.msra.mxu0 %v3829_v13  ;;  %v2618_v13 = vld [vmem:[%s4780_s12] sm:$0x1] }
 0x42e   : > { %3590 = vmatprep.subr.bf16.mxu1 %v3910_v34  ;;  %3626 = vmatprep.subr.bf16.mxu0 %v3910_v34 }
 0x430   : > { %3575 = vmatmul.mubr.msk.bf16.vlgmr.msra.gmra.mrb[32].mxu1 %vm2018_vm9, %v2216_v15  ;;  %3611 = vmatmul.mubr.msk.bf16.vlgmr.msra.gmra.mrb[32].mxu0 %vm2018_vm9, %v2451_v17 }
 0x431   : > { %3591 = vmatpush3.bf16.msra.mxu1 %v3830_v14  ;;  %3598 = vmatprep.mubr.msk.bf16.mxu1 %vm3911_vm0, %v3910_v34 }
 0x432   : > { %3592 = vmatprep.subr.bf16.mxu1 %v3910_v34  ;;  %3642 = vmatprep.mubr.msk.bf16.mxu0 %vm3911_vm0, %v3910_v34 }
 0x433   : > { %3627 = vmatpush3.bf16.msra.mxu0 %v3838_v27 }
 0x434   : > { %3628 = vmatprep.subr.bf16.mxu0 %v3910_v34 }
 0x435   : > { %3593 = vmatpush3.bf16.msra.mxu1 %v3831_v18 }
 0x436   : > { %3594 = vmatprep.subr.bf16.mxu1 %v3910_v34 }
 0x437   : > { %3629 = vmatpush3.bf16.msra.mxu0 %v3839_v28 }
 0x438   : > { %3630 = vmatprep.subr.bf16.mxu0 %v3910_v34 }
 0x439   : > { %3595 = vmatpush3.bf16.msra.mxu1 %v3832_v19 }
 0x43a   : > { %3596 = vmatprep.subr.bf16.mxu1 %v3910_v34 }
 0x43b   : > { %3631 = vmatpush3.bf16.msra.mxu0 %v3840_v29 }
 0x43c   : > { %3632 = vmatprep.subr.bf16.mxu0 %v3910_v34 }
 0x43d   : > { %3597 = vmatpush3.bf16.msra.mxu1 %v3833_v20 }
 0x43e   : > { %3614 = vmatprep.subr.bf16.mxu1 %v3910_v34 }
 0x43f   : > { %3633 = vmatpush3.bf16.msra.mxu0 %v3841_v30 }
 0x440   : > { %3599 = vmatmul.mubr.msk.bf16.vlgmr.msra.gmra.mrb[36].mxu1 %vm2018_vm9, %v2373_v22  ;;  %3634 = vmatprep.subr.bf16.mxu0 %v3910_v34 }
 0x441   : > { %3615 = vmatpush3.bf16.msra.mxu1 %v3834_v21  ;;  %3622 = vmatprep.mubr.msk.bf16.mxu1 %vm3911_vm0, %v3910_v34 }
 0x442   : > { %3616 = vmatprep.subr.bf16.mxu1 %v3910_v34 }
 0x443   : > { %3635 = vmatpush3.bf16.msra.mxu0 %v3842_v31 }
 0x444   : > { %3636 = vmatprep.subr.bf16.mxu0 %v3910_v34 }
 0x445   : > { %3617 = vmatpush3.bf16.msra.mxu1 %v3835_v23 }
 0x446   : > { %3618 = vmatprep.subr.bf16.mxu1 %v3910_v34 }
 0x447   : > { %3637 = vmatpush3.bf16.msra.mxu0 %v3843_v32 }
 0x448   : > { %3638 = vmatprep.subr.bf16.mxu0 %v3910_v34 }
 0x449   : > { %3619 = vmatpush3.bf16.msra.mxu1 %v3836_v26 }
 0x44a   : > { %3620 = vmatprep.subr.bf16.mxu1 %v3910_v34 }
 0x44b   : > { %3639 = vmatpush3.bf16.msra.mxu0 %v3844_v33 }
 0x44c   : > { %3640 = vmatprep.subr.bf16.mxu0 %v3910_v34 }
 0x44d   : > { %3621 = vmatpush3.bf16.msra.mxu1 %v3837_v24 }
 0x44f   : > { %3641 = vmatpush3.bf16.msra.mxu0 %v3845_v35 }
 0x450   : > { %3623 = vmatmul.mubr.msk.bf16.vlgmr.msra.gmra.mrb[40].mxu1 %vm2018_vm9, %v2529_v25 }
 0x4e3   : > { %v2056_v36 = vpop.f32.mrb[24].mxu1  ;;  %v2200_v37 = vpop.f32.mrb[24].mxu0 }
 0x4e4   : > { %v3540_v38 = vpop.f32.mrb[25].mxu1  ;;  %v3564_v39 = vpop.f32.mrb[25].mxu0 }
 0x4e5   : > { %v2059_v40 = vpop.f32.mrb[26].mxu1  ;;  %v2203_v41 = vpop.f32.mrb[26].mxu0 }
 0x4e6   : > { %v3541_v42 = vpop.f32.mrb[27].mxu1  ;;  %v3565_v43 = vpop.f32.mrb[27].mxu0 }
 0x4f3   : > { %v2123_v44 = vpop.f32.mrb[28].mxu1  ;;  %v2356_v45 = vpop.f32.mrb[28].mxu0 }
 0x4f4   : > { %v2124_v46 = vadd.f32 %v2123_v44, %v2056_v36  ;;  %v3552_v47 = vpop.f32.mrb[29].mxu1  ;;  %v3588_v48 = vpop.f32.mrb[29].mxu0 }
 0x4f5   : > { %v2126_v49 = vpop.f32.mrb[30].mxu1  ;;  %v2359_v34 = vpop.f32.mrb[30].mxu0 }
 0x4f6   : > { %v3553_v50 = vpop.f32.mrb[31].mxu1  ;;  %v3589_v51 = vpop.f32.mrb[31].mxu0  ;;  %v2206_v52 = vadd.f32 %v2200_v37, %v2124_v46 }
 0x503   : > { %v2278_v53 = vpop.f32.mrb[32].mxu1  ;;  %v2513_v54 = vpop.f32.mrb[32].mxu0 }
 0x504   : > { %v2284_v55 = vadd.f32 %v2278_v53, %v2206_v52  ;;  %v3576_v56 = vpop.f32.mrb[33].mxu1  ;;  %v3612_v57 = vpop.f32.mrb[33].mxu0 }
 0x505   : > { %v2281_v58 = vpop.f32.mrb[34].mxu1  ;;  %v2516_v59 = vpop.f32.mrb[34].mxu0 }
 0x506   : > { %v3577_v60 = vpop.f32.mrb[35].mxu1  ;;  %v3613_v61 = vpop.f32.mrb[35].mxu0  ;;  %v2362_v62 = vadd.f32 %v2356_v45, %v2284_v55 }
 0x513   : > { %v2435_v63 = vpop.f32.mrb[36].mxu1 }
 0x514   : > { %v2441_v0 = vadd.f32 %v2435_v63, %v2362_v62  ;;  %v3600_v1 = vpop.f32.mrb[37].mxu1 }
 0x515   : > { %v2438_v2 = vpop.f32.mrb[38].mxu1 }
 0x516   : > { %v3601_v3 = vpop.f32.mrb[39].mxu1  ;;  %v2519_v4 = vadd.f32 %v2513_v54, %v2441_v0 }
 0x523   : > { %v2591_v5 = vpop.f32.mrb[40].mxu1 }
 0x524   : > { %v2597_v7 = vadd.f32 %v2591_v5, %v2519_v4  ;;  %v3624_v8 = vpop.f32.mrb[41].mxu1 }
 0x525   : > { %v2594_v9 = vpop.f32.mrb[42].mxu1 }
 0x526   : > { %v2599_v10 = vadd.f32 %v2598_v6, %v2597_v7  ;;  %v3625_v11 = vpop.f32.mrb[43].mxu1 }
 0x528   : > { %v2600_v16 = vmax.f32 %v2599_v10, 0.0 }
 0x52a   : > { %v2601_v12 = vpack.c.bf16 %v2600_v16, %v2600_v16 }
 0x52c   : > { %3643 = vmatmul.mubr.bf16.vlgmr.msra.gmra.mrb[36].mxu0 %v2601_v12 }
 0x5ff   : > { %v2701_v14 = vpop.f32.mrb[36].mxu0 }
 0x600   : > { %v2702_v15 = vadd.f32 %v2701_v14, %v2618_v13  ;;  %v3644_v17 = vpop.f32.mrb[37].mxu0 }
 0x601   : > { %v2704_v18 = vpop.f32.mrb[38].mxu0 }
 0x602   : > { %2707 = vst [vmem:[%s435_s17] sm:$0x1] %v2702_v15  ;;  %v3645_v19 = vpop.f32.mrb[39].mxu0 }
 0x603   : > { %3859 = shalt.err (!%p3856_p3)
}
 0x604   : > { %s3860_s14 = scalar_lea.hbm %s4726_s24, 16  ;;  %s3864_s17 = scalar_lea.hbm %s4781_s13, 32 }
 0x605   : > { %p3861_p4 = scmp.ne.s32.totalorder %s4726_s24, %s3860_s14  ;;  %p3865_p9 = scmp.lt.u32.totalorder %s4726_s24, %s4781_s13 }
 0x606   : > { %p3866_p10 = scmp.lt.u32.totalorder %s3864_s17, %s3860_s14  ;;  %p3868_p12 = scmp.lt.u32.totalorder %s3860_s14, %s4726_s24 }
 0x607   : > { %p3862_p7 = pnand %p3861_p4, %p4022_p5 }
 0x608   : > { %p3867_p11 = por %p3866_p10, %p3865_p9 }
 0x609   : > { %p3863_p8 = pneg %p3862_p7 }
 0x60a   : > { %p3869_p13 = por %p3868_p12, %p3867_p11 }
 0x60c   : > { %p3870_p0 = pnand %p3869_p13, %p3863_p8 }
 0x60e   : > { %3873 = shalt.err (!%p3870_p0)
}
 0x60f   : > { %3646 = dma.vmem_to_hbm [thread:$0]  (%p4022_p5), %s4728_s20, 16, %s4726_s24, %s2709_s30  }
 0x610 PF: > { %p3652_p1 = scmp.ge.s32.totalorder %s3908_s28, 2  ;;  %s2733_s22 = sand.u32 1, %s3896_s25  }
 0x611   : > { %s2734_s15 = scalar_lea.sflag [#allocation3], %s2733_s22 }
 0x612   : > { %p3649_p2 = pnand %p3652_p1, %p4026_p6 }
 0x614   : > { %3891 = dma.done.wait (!%p3649_p2), %s2734_s15, 16  }
 0x615   : > { %3893 = vsyncadd (!%p3649_p2), %s2734_s15, 4294967280  ;;  %s4797_s28 = sld [smem:[#allocation6_spill]]  ;;  %s4798_s27 = sld [smem:[#allocation5_spill]] }
 0x616   : > { %s4799_s14 = sld [smem:[#allocation7_spill]]  ;;  %s4800_s25 = smov %s3900_s26 }
 0x61b   : > { %p23_p3 = scmp.ge.s32.totalorder %s4797_s28, 4   ;;  %s4801_s26 = smov %s4798_s27 }
 0x61c   : > { %s4802_s27 = smov %s4799_s14 }
 0x61d   :  { %25 = sbr.rel (!%p23_p3) target bundleno = 3 (0x3), region = 121 }
 0x624   :  { %2738 = vsyncpa [#allocation3], 1 }
 0x625   :  { %2740 = vsyncpa [#allocation3 + $0x1], 1 }

</bundles_post_ra>
